<compile_context>
chip_gen: v5e
topology: v5e:2x2
jax: 0.10.0
libtpu: 0.0.40
codegen_flags: <defaults>
</compile_context>

<pallas_src>
import functools
import math

import numpy as np

import jax
import jax.numpy as jnp
from jax.experimental import pallas as pl
from jax.experimental.pallas import tpu as pltpu


# ---------------------------------------------------------------------------
# helpers
# ---------------------------------------------------------------------------
def _round_up(v, m):
    return ((v + m - 1) // m) * m


def _pad2d(a, rows, cols, dtype):
    out = jnp.zeros((rows, cols), dtype)
    return out.at[: a.shape[0], : a.shape[1]].set(a.astype(dtype))


# ---------------------------------------------------------------------------
# kernel 1: dense projection   support = x @ W      (run once per layer)
# ---------------------------------------------------------------------------
def _project_kernel(x_ref, w_ref, out_ref):
    out_ref[...] = jnp.dot(
        x_ref[...], w_ref[...], preferred_element_type=jnp.float32
    ).astype(out_ref.dtype)


def _project(x_p, w_p, *, tm):
    n_pad, fin = x_p.shape
    fout = w_p.shape[1]
    return pl.pallas_call(
        _project_kernel,
        out_shape=jax.ShapeDtypeStruct((n_pad, fout), jnp.bfloat16),
        grid_spec=pltpu.PrefetchScalarGridSpec(
            num_scalar_prefetch=0,
            grid=(n_pad // tm,),
            in_specs=[
                pl.BlockSpec((tm, fin), lambda i: (i, 0)),
                # weight block index is constant -> Pallas only DMAs it once.
                pl.BlockSpec((fin, fout), lambda i: (0, 0)),
            ],
            out_specs=pl.BlockSpec((tm, fout), lambda i: (i, 0)),
        ),
        compiler_params=pltpu.CompilerParams(
            dimension_semantics=("parallel",),
            vmem_limit_bytes=32 << 20,
        ),
    )(x_p, w_p)


# ---------------------------------------------------------------------------
# kernel 2: block-sparse aggregation   out = act(adj @ support + b)
#   grid = (row_blocks, max_nonzero_col_blocks); col_tbl / cnt are scalar-prefetched
#   block-CSR tables giving the nonzero adj column blocks for each row block.
# ---------------------------------------------------------------------------
def _aggregate_kernel(col_tbl_ref, cnt_ref, adj_ref, sup_ref, b_ref, out_ref,
                      acc_ref, *, nclass, activation):
    i = pl.program_id(0)
    j = pl.program_id(1)

    @pl.when(j == 0)
    def _():
        acc_ref[...] = jnp.zeros_like(acc_ref)

    # Skip padded / empty block-CSR entries (their index_map repeats the previous
    # block index, so the DMA is de-duplicated too). adj & support are bf16 with
    # f32 accumulation on the MXU.
    @pl.when(j < cnt_ref[i])
    def _():
        acc_ref[...] += jnp.dot(adj_ref[...], sup_ref[...],
                                preferred_element_type=jnp.float32)

    @pl.when(j == pl.num_programs(1) - 1)
    def _():
        z = acc_ref[...] + b_ref[...]                       # f32
        if activation == "relu":
            out_ref[...] = jnp.maximum(z, 0.0).astype(out_ref.dtype)
        else:  # log_softmax over the (padded) class axis, masked, all in f32
            col = jax.lax.broadcasted_iota(jnp.int32, z.shape, 1)
            z = jnp.where(col < nclass, z, -1e30)
            z_max = jnp.max(z, axis=1, keepdims=True)
            z_shift = z - z_max
            lse = jnp.log(jnp.sum(jnp.exp(z_shift), axis=1, keepdims=True))
            out_ref[...] = (z_shift - lse).astype(out_ref.dtype)


def _aggregate(adj_p, sup, b_p, col_tbl, cnt, *, activation, nclass, out_dtype,
               tm, tk, max_k):
    n_pad = adj_p.shape[0]
    fout = sup.shape[1]
    nrb = n_pad // tm

    def adj_map(i, j, tbl_ref, cnt_ref):
        return (i, tbl_ref[i * max_k + j])

    def sup_map(i, j, tbl_ref, cnt_ref):
        return (tbl_ref[i * max_k + j], 0)

    def b_map(i, j, tbl_ref, cnt_ref):
        return (0, 0)

    def out_map(i, j, tbl_ref, cnt_ref):
        return (i, 0)

    kernel = functools.partial(_aggregate_kernel, nclass=nclass,
                               activation=activation)
    return pl.pallas_call(
        kernel,
        out_shape=jax.ShapeDtypeStruct((n_pad, fout), out_dtype),
        grid_spec=pltpu.PrefetchScalarGridSpec(
            num_scalar_prefetch=2,                 # col_tbl, cnt -> SMEM
            grid=(nrb, max_k),
            in_specs=[
                pl.BlockSpec((tm, tk), adj_map),   # adj row/col tile (bf16)
                pl.BlockSpec((tk, fout), sup_map),  # support rows for adj cols
                pl.BlockSpec((1, fout), b_map),     # bias (resident)
            ],
            out_specs=pl.BlockSpec((tm, fout), out_map),
            scratch_shapes=[pltpu.VMEM((tm, fout), jnp.float32)],
        ),
        compiler_params=pltpu.CompilerParams(
            dimension_semantics=("parallel", "arbitrary"),
            vmem_limit_bytes=32 << 20,              # safe on v7x's 64 MiB VMEM
        ),
    )(col_tbl, cnt, adj_p, sup, b_p)


# ---------------------------------------------------------------------------
# one-time (host-side) adjacency preprocessing: pad, cast, block-CSR tables
# ---------------------------------------------------------------------------
def preprocess_adj(adj, *, tm, tk, adj_dtype=jnp.bfloat16):
    """Pads adj to a tile-aligned square, casts it (bf16 by default; fp8 e4m3 is an
    option on v7x only), and builds block-CSR tables so the aggregation kernel
    only visits nonzero (row_block, col_block) tiles. Call once; adj is static."""
    adj_np = np.asarray(adj, dtype=np.float32)
    n = adj_np.shape[0]

    block = tm * tk // math.gcd(tm, tk)            # n_pad must divide by tm AND tk
    n_pad = _round_up(n, block)
    nrb = n_pad // tm
    # even row-tile count -> balanced megacore split on v7x (zero-cost: the extra
    # row block is all-zero and its compute is skipped by the block-CSR tables).
    if nrb > 1 and nrb % 2 == 1 and (block // tm) % 2 == 1:
        n_pad += block
        nrb = n_pad // tm
    ncb = n_pad // tk

    adj_pad = np.zeros((n_pad, n_pad), np.float32)
    adj_pad[:n, :n] = adj_np

    blk_nz = adj_pad.reshape(nrb, tm, ncb, tk).any(axis=(1, 3))   # [nrb, ncb]
    cnt = blk_nz.sum(axis=1).astype(np.int32)                     # [nrb]
    max_k = max(int(cnt.max()), 1)
    col_tbl = np.zeros((nrb, max_k), np.int32)
    for i in range(nrb):
        cols = np.nonzero(blk_nz[i])[0]
        if cols.size:
            col_tbl[i, : cols.size] = cols
            col_tbl[i, cols.size:] = cols[-1]      # repeat last -> DMA de-duped
    col_tbl = col_tbl.reshape(-1)                  # flatten: cheap SMEM layout

    return (jnp.asarray(adj_pad, dtype=adj_dtype),
            jnp.asarray(col_tbl),
            jnp.asarray(cnt),
            max_k)


# ---------------------------------------------------------------------------
# jitted forward on the preprocessed adjacency
# ---------------------------------------------------------------------------
@functools.partial(jax.jit, static_argnames=("tm", "tk"))
def gcn_forward(x, adj_p, col_tbl, cnt, w1, b1, w2, b2, *, tm, tk):
    n, nfeat = x.shape
    nhid = w1.shape[1]
    nclass = w2.shape[1]
    n_pad = adj_p.shape[0]
    max_k = col_tbl.shape[0] // cnt.shape[0]

    fin_pad = _round_up(nfeat, 128)
    fhid_pad = _round_up(nhid, 128)
    fcls_pad = _round_up(nclass, 128)

    # lane-dense padding (zeros), bf16 operands for MXU / HBM efficiency.
    x_p = _pad2d(x, n_pad, fin_pad, jnp.bfloat16)
    w1_p = _pad2d(w1, fin_pad, fhid_pad, jnp.bfloat16)
    b1_p = _pad2d(b1, 1, fhid_pad, jnp.float32)
    w2_p = _pad2d(w2, fhid_pad, fcls_pad, jnp.bfloat16)
    b2_p = _pad2d(b2, 1, fcls_pad, jnp.float32)

    # layer 1: h = relu(adj @ (x @ W1) + b1)
    sup1 = _project(x_p, w1_p, tm=tm)
    h_p = _aggregate(adj_p, sup1, b1_p, col_tbl, cnt, activation="relu",
                     nclass=None, out_dtype=jnp.bfloat16, tm=tm, tk=tk,
                     max_k=max_k)

    # TODO(synk): F.dropout(training=self.training) — identity in eval mode.

    # layer 2: log_softmax(adj @ (h @ W2) + b2, axis=1)
    sup2 = _project(h_p, w2_p, tm=tm)
    out_p = _aggregate(adj_p, sup2, b2_p, col_tbl, cnt, activation="log_softmax",
                       nclass=nclass, out_dtype=jnp.float32, tm=tm, tk=tk,
                       max_k=max_k)

    return out_p[:n, :nclass]


def default_tiles(n, *, tm=512, tk=1024):
    """Production tile sizes, clamped for small graphs."""
    cap = _round_up(n, 128)
    return min(tm, cap), min(tk, cap)


# ---------------------------------------------------------------------------
# parameter init matching GraphConvolution.reset_parameters
# ---------------------------------------------------------------------------
def init_gcn_params(key, nfeat, nhid, nclass):
    """uniform(-stdv, stdv) with stdv = 1/sqrt(out_features)."""
    k1, k2, k3, k4 = jax.random.split(key, 4)
    stdv1 = 1.0 / math.sqrt(nhid)
    stdv2 = 1.0 / math.sqrt(nclass)
    w1 = jax.random.uniform(k1, (nfeat, nhid), jnp.float32, -stdv1, stdv1)
    b1 = jax.random.uniform(k2, (1, nhid), jnp.float32, -stdv1, stdv1)
    w2 = jax.random.uniform(k3, (nhid, nclass), jnp.float32, -stdv2, stdv2)
    b2 = jax.random.uniform(k4, (1, nclass), jnp.float32, -stdv2, stdv2)
    return w1, b1, w2, b2


def _gcn_reference(x, adj, w1, b1, w2, b2):
    h = jnp.maximum(adj @ (x @ w1) + b1, 0.0)
    z = adj @ (h @ w2) + b2
    return jax.nn.log_softmax(z, axis=1)


if __name__ == "__main__":
    key = jax.random.PRNGKey(0)
    N, nfeat, nhid, nclass = 300, 40, 16, 7
    # small tiles here so the test exercises the multi-block + block-CSR skip path;
    # real graphs should use default_tiles(N) -> (512, 1024).
    tm, tk = 128, 128

    kx, kadj, kparams = jax.random.split(key, 3)

    # node features
    x = jax.random.normal(kx, (N, nfeat), jnp.float32)

    # banded + random sparse symmetric-normalized adjacency with self-loops
    # (band < tile so some off-diagonal 128x128 blocks are all-zero -> skipped).
    row = jnp.arange(N)[:, None]
    col = jnp.arange(N)[None, :]
    band = (jnp.abs(row - col) < 40).astype(jnp.float32)
    rand = (jax.random.uniform(kadj, (N, N)) < 0.05).astype(jnp.float32) * band
    a = jnp.maximum(rand, rand.T) + jnp.eye(N, dtype=jnp.float32)
    deg = jnp.sum(a, axis=1)
    d_inv_sqrt = 1.0 / jnp.sqrt(deg)
    adj = a * d_inv_sqrt[:, None] * d_inv_sqrt[None, :]

    w1, b1, w2, b2 = init_gcn_params(kparams, nfeat, nhid, nclass)

    # one-time host preprocessing of the (static) adjacency
    adj_p, col_tbl, cnt, max_k = preprocess_adj(adj, tm=tm, tk=tk)

    out = gcn_forward(x, adj_p, col_tbl, cnt, w1, b1, w2, b2, tm=tm, tk=tk)
    jax.block_until_ready(out)

    assert out.shape == (N, nclass)

    # sanity 1: rows of exp(log_softmax) sum to 1
    row_sums = jnp.sum(jnp.exp(out), axis=1)
    assert bool(jnp.all(jnp.abs(row_sums - 1.0) < 1e-4))

    # sanity 2: matches the pure-JAX f32 reference within bf16 matmul tolerance
    ref = _gcn_reference(x, adj, w1, b1, w2, b2)
    max_err = float(jnp.max(jnp.abs(out - ref)))
    assert max_err < 1e-1, f"max abs error vs reference: {max_err}"

    print("KERNEL_OK")
</pallas_src>

<mosaic_0001>
module attributes {stable_mosaic.version = 11 : i64} {
  func.func @_aggregate_kernel(%arg0: i32, %arg1: i32, %arg2: memref<12xi32, #tpu.memory_space<smem>>, %arg3: memref<4xi32, #tpu.memory_space<smem>>, %arg4: memref<128x128xbf16, #tpu.memory_space<vmem>>, %arg5: memref<128x128xbf16, #tpu.memory_space<vmem>>, %arg6: memref<1x128xf32, #tpu.memory_space<vmem>>, %arg7: memref<128x128xbf16, #tpu.memory_space<vmem>>, %arg8: memref<128x128xf32, #tpu.memory_space<vmem>>) attributes {dimension_semantics = [#tpu.dimension_semantics<parallel>, #tpu.dimension_semantics<arbitrary>], iteration_bounds = array<i64: 4, 3>, scalar_prefetch = 2 : i64, scratch_operands = 1 : i64, tpu.core_type = #tpu.core_type<tc>, window_params = [{transform_indices = @transform_0, window_bounds = array<i64: 128, 128>}, {transform_indices = @transform_1, window_bounds = array<i64: 128, 128>}, {pipeline_mode = #tpu.pipeline_mode<synchronous>, transform_indices = @transform_2, window_bounds = array<i64: 1, 128>}, {transform_indices = @transform_3, window_bounds = array<i64: 128, 128>}]} {
    %c0_i32 = arith.constant 0 : i32
    %0 = arith.cmpi eq, %arg1, %c0_i32 : i32
    %1 = arith.extui %0 : i1 to i32
    %c0_i32_0 = arith.constant 0 : i32
    %2 = arith.cmpi ne, %1, %c0_i32_0 : i32
    scf.if %2 {
      %cst = arith.constant 0.000000e+00 : f32
      %11 = vector.broadcast %cst : f32 to vector<128x128xf32>
      %c0 = arith.constant 0 : index
      %c0_3 = arith.constant 0 : index
      %12 = vector.load %arg8[%c0, %c0_3] : memref<128x128xf32, #tpu.memory_space<vmem>>, vector<128x128xf32>
      tpu.vector_store %arg8[%c0, %c0_3], %11 {strides = array<i32>} : memref<128x128xf32, #tpu.memory_space<vmem>>, vector<128x128xf32>,
    } else {
    }
    %3 = arith.index_cast %arg0 : i32 to index
    %4 = memref.load %arg3[%3] : memref<4xi32, #tpu.memory_space<smem>>
    %5 = arith.cmpi slt, %arg1, %4 : i32
    %6 = arith.extui %5 : i1 to i32
    %c0_i32_1 = arith.constant 0 : i32
    %7 = arith.cmpi ne, %6, %c0_i32_1 : i32
    scf.if %7 {
      %c0 = arith.constant 0 : index
      %c0_3 = arith.constant 0 : index
      %11 = vector.load %arg8[%c0, %c0_3] : memref<128x128xf32, #tpu.memory_space<vmem>>, vector<128x128xf32>
      %c0_4 = arith.constant 0 : index
      %c0_5 = arith.constant 0 : index
      %12 = vector.load %arg4[%c0_4, %c0_5] : memref<128x128xbf16, #tpu.memory_space<vmem>>, vector<128x128xbf16>
      %c0_6 = arith.constant 0 : index
      %c0_7 = arith.constant 0 : index
      %13 = vector.load %arg5[%c0_6, %c0_7] : memref<128x128xbf16, #tpu.memory_space<vmem>>, vector<128x128xbf16>
      %cst = arith.constant dense<0.000000e+00> : vector<128x128xf32>
      %14 = tpu.matmul %12, %13, %cst {dimension_numbers = #tpu.dot_dimension_numbers<[1], [0], [0], [1], [0, 0, 1, 1], [], []>} : vector<128x128xbf16>, vector<128x128xbf16>, vector<128x128xf32> -> vector<128x128xf32>
      %15 = arith.addf %11, %14 : vector<128x128xf32>
      %c0_8 = arith.constant 0 : index
      %c0_9 = arith.constant 0 : index
      %16 = vector.load %arg8[%c0_8, %c0_9] : memref<128x128xf32, #tpu.memory_space<vmem>>, vector<128x128xf32>
      tpu.vector_store %arg8[%c0_8, %c0_9], %15 {strides = array<i32>} : memref<128x128xf32, #tpu.memory_space<vmem>>, vector<128x128xf32>,
    } else {
    }
    %c2_i32 = arith.constant 2 : i32
    %8 = arith.cmpi eq, %arg1, %c2_i32 : i32
    %9 = arith.extui %8 : i1 to i32
    %c0_i32_2 = arith.constant 0 : i32
    %10 = arith.cmpi ne, %9, %c0_i32_2 : i32
    scf.if %10 {
      %c0 = arith.constant 0 : index
      %c0_3 = arith.constant 0 : index
      %11 = vector.load %arg8[%c0, %c0_3] : memref<128x128xf32, #tpu.memory_space<vmem>>, vector<128x128xf32>
      %c0_4 = arith.constant 0 : index
      %c0_5 = arith.constant 0 : index
      %12 = vector.load %arg6[%c0_4, %c0_5] : memref<1x128xf32, #tpu.memory_space<vmem>>, vector<1x128xf32>
      %13 = vector.broadcast %12 : vector<1x128xf32> to vector<128x128xf32>
      %14 = arith.addf %11, %13 : vector<128x128xf32>
      %cst = arith.constant 0.000000e+00 : f32
      %15 = vector.broadcast %cst : f32 to vector<128x128xf32>
      %16 = arith.maximumf %14, %15 : vector<128x128xf32>
      %17 = arith.truncf %16 : vector<128x128xf32> to vector<128x128xbf16>
      %c0_6 = arith.constant 0 : index
      %c0_7 = arith.constant 0 : index
      %18 = vector.load %arg7[%c0_6, %c0_7] : memref<128x128xbf16, #tpu.memory_space<vmem>>, vector<128x128xbf16>
      tpu.vector_store %arg7[%c0_6, %c0_7], %17 {strides = array<i32>} : memref<128x128xbf16, #tpu.memory_space<vmem>>, vector<128x128xbf16>,
    } else {
    }
    return
  }
  func.func @transform_0(%arg0: i32, %arg1: i32, %arg2: memref<12xi32, #tpu.memory_space<smem>>, %arg3: memref<4xi32, #tpu.memory_space<smem>>) -> (i32, i32) {
    %c3_i32 = arith.constant 3 : i32
    %0 = arith.muli %arg0, %c3_i32 : i32
    %1 = arith.addi %0, %arg1 : i32
    %2 = arith.index_cast %1 : i32 to index
    %3 = memref.load %arg2[%2] : memref<12xi32, #tpu.memory_space<smem>>
    %c0_i32 = arith.constant 0 : i32
    return %arg0, %3 : i32, i32
  }
  func.func @transform_1(%arg0: i32, %arg1: i32, %arg2: memref<12xi32, #tpu.memory_space<smem>>, %arg3: memref<4xi32, #tpu.memory_space<smem>>) -> (i32, i32) {
    %c3_i32 = arith.constant 3 : i32
    %0 = arith.muli %arg0, %c3_i32 : i32
    %1 = arith.addi %0, %arg1 : i32
    %2 = arith.index_cast %1 : i32 to index
    %3 = memref.load %arg2[%2] : memref<12xi32, #tpu.memory_space<smem>>
    %c0_i32 = arith.constant 0 : i32
    %c0_i32_0 = arith.constant 0 : i32
    return %3, %c0_i32 : i32, i32
  }
  func.func @transform_2(%arg0: i32, %arg1: i32, %arg2: memref<12xi32, #tpu.memory_space<smem>>, %arg3: memref<4xi32, #tpu.memory_space<smem>>) -> (i32, i32) {
    %c0_i32 = arith.constant 0 : i32
    %c0_i32_0 = arith.constant 0 : i32
    %c0_i32_1 = arith.constant 0 : i32
    return %c0_i32, %c0_i32_0 : i32, i32
  }
  func.func @transform_3(%arg0: i32, %arg1: i32, %arg2: memref<12xi32, #tpu.memory_space<smem>>, %arg3: memref<4xi32, #tpu.memory_space<smem>>) -> (i32, i32) {
    %c0_i32 = arith.constant 0 : i32
    %c0_i32_0 = arith.constant 0 : i32
    return %arg0, %c0_i32 : i32, i32
  }
}

module attributes {stable_mosaic.version = 11 : i64} {
  func.func @_project_kernel(%arg0: i32, %arg1: memref<128x128xbf16, #tpu.memory_space<vmem>>, %arg2: memref<128x128xbf16, #tpu.memory_space<vmem>>, %arg3: memref<128x128xbf16, #tpu.memory_space<vmem>>) attributes {dimension_semantics = [#tpu.dimension_semantics<parallel>], iteration_bounds = array<i64: 4>, scalar_prefetch = 0 : i64, scratch_operands = 0 : i64, tpu.core_type = #tpu.core_type<tc>, window_params = [{transform_indices = @transform_0, window_bounds = array<i64: 128, 128>}, {pipeline_mode = #tpu.pipeline_mode<synchronous>, transform_indices = @transform_1, window_bounds = array<i64: 128, 128>}, {transform_indices = @transform_2, window_bounds = array<i64: 128, 128>}]} {
    %c0 = arith.constant 0 : index
    %c0_0 = arith.constant 0 : index
    %0 = vector.load %arg1[%c0, %c0_0] : memref<128x128xbf16, #tpu.memory_space<vmem>>, vector<128x128xbf16>
    %c0_1 = arith.constant 0 : index
    %c0_2 = arith.constant 0 : index
    %1 = vector.load %arg2[%c0_1, %c0_2] : memref<128x128xbf16, #tpu.memory_space<vmem>>, vector<128x128xbf16>
    %cst = arith.constant dense<0.000000e+00> : vector<128x128xf32>
    %2 = tpu.matmul %0, %1, %cst {dimension_numbers = #tpu.dot_dimension_numbers<[1], [0], [0], [1], [0, 0, 1, 1], [], []>} : vector<128x128xbf16>, vector<128x128xbf16>, vector<128x128xf32> -> vector<128x128xf32>
    %3 = arith.truncf %2 : vector<128x128xf32> to vector<128x128xbf16>
    %c0_3 = arith.constant 0 : index
    %c0_4 = arith.constant 0 : index
    %4 = vector.load %arg3[%c0_3, %c0_4] : memref<128x128xbf16, #tpu.memory_space<vmem>>, vector<128x128xbf16>
    tpu.vector_store %arg3[%c0_3, %c0_4], %3 {strides = array<i32>} : memref<128x128xbf16, #tpu.memory_space<vmem>>, vector<128x128xbf16>,
    return
  }
  func.func @transform_0(%arg0: i32) -> (i32, i32) {
    %c0_i32 = arith.constant 0 : i32
    %c0_i32_0 = arith.constant 0 : i32
    return %arg0, %c0_i32 : i32, i32
  }
  func.func @transform_1(%arg0: i32) -> (i32, i32) {
    %c0_i32 = arith.constant 0 : i32
    %c0_i32_0 = arith.constant 0 : i32
    %c0_i32_1 = arith.constant 0 : i32
    return %c0_i32, %c0_i32_0 : i32, i32
  }
  func.func @transform_2(%arg0: i32) -> (i32, i32) {
    %c0_i32 = arith.constant 0 : i32
    %c0_i32_0 = arith.constant 0 : i32
    return %arg0, %c0_i32 : i32, i32
  }
}

module attributes {stable_mosaic.version = 11 : i64} {
  func.func @_aggregate_kernel(%arg0: i32, %arg1: i32, %arg2: memref<12xi32, #tpu.memory_space<smem>>, %arg3: memref<4xi32, #tpu.memory_space<smem>>, %arg4: memref<128x128xbf16, #tpu.memory_space<vmem>>, %arg5: memref<128x128xbf16, #tpu.memory_space<vmem>>, %arg6: memref<1x128xf32, #tpu.memory_space<vmem>>, %arg7: memref<128x128xf32, #tpu.memory_space<vmem>>, %arg8: memref<128x128xf32, #tpu.memory_space<vmem>>) attributes {dimension_semantics = [#tpu.dimension_semantics<parallel>, #tpu.dimension_semantics<arbitrary>], iteration_bounds = array<i64: 4, 3>, scalar_prefetch = 2 : i64, scratch_operands = 1 : i64, tpu.core_type = #tpu.core_type<tc>, window_params = [{transform_indices = @transform_0, window_bounds = array<i64: 128, 128>}, {transform_indices = @transform_1, window_bounds = array<i64: 128, 128>}, {pipeline_mode = #tpu.pipeline_mode<synchronous>, transform_indices = @transform_2, window_bounds = array<i64: 1, 128>}, {transform_indices = @transform_3, window_bounds = array<i64: 128, 128>}]} {
    %c0_i32 = arith.constant 0 : i32
    %0 = arith.cmpi eq, %arg1, %c0_i32 : i32
    %1 = arith.extui %0 : i1 to i32
    %c0_i32_0 = arith.constant 0 : i32
    %2 = arith.cmpi ne, %1, %c0_i32_0 : i32
    scf.if %2 {
      %cst = arith.constant 0.000000e+00 : f32
      %11 = vector.broadcast %cst : f32 to vector<128x128xf32>
      %c0 = arith.constant 0 : index
      %c0_3 = arith.constant 0 : index
      %12 = vector.load %arg8[%c0, %c0_3] : memref<128x128xf32, #tpu.memory_space<vmem>>, vector<128x128xf32>
      tpu.vector_store %arg8[%c0, %c0_3], %11 {strides = array<i32>} : memref<128x128xf32, #tpu.memory_space<vmem>>, vector<128x128xf32>,
    } else {
    }
    %3 = arith.index_cast %arg0 : i32 to index
    %4 = memref.load %arg3[%3] : memref<4xi32, #tpu.memory_space<smem>>
    %5 = arith.cmpi slt, %arg1, %4 : i32
    %6 = arith.extui %5 : i1 to i32
    %c0_i32_1 = arith.constant 0 : i32
    %7 = arith.cmpi ne, %6, %c0_i32_1 : i32
    scf.if %7 {
      %c0 = arith.constant 0 : index
      %c0_3 = arith.constant 0 : index
      %11 = vector.load %arg8[%c0, %c0_3] : memref<128x128xf32, #tpu.memory_space<vmem>>, vector<128x128xf32>
      %c0_4 = arith.constant 0 : index
      %c0_5 = arith.constant 0 : index
      %12 = vector.load %arg4[%c0_4, %c0_5] : memref<128x128xbf16, #tpu.memory_space<vmem>>, vector<128x128xbf16>
      %c0_6 = arith.constant 0 : index
      %c0_7 = arith.constant 0 : index
      %13 = vector.load %arg5[%c0_6, %c0_7] : memref<128x128xbf16, #tpu.memory_space<vmem>>, vector<128x128xbf16>
      %cst = arith.constant dense<0.000000e+00> : vector<128x128xf32>
      %14 = tpu.matmul %12, %13, %cst {dimension_numbers = #tpu.dot_dimension_numbers<[1], [0], [0], [1], [0, 0, 1, 1], [], []>} : vector<128x128xbf16>, vector<128x128xbf16>, vector<128x128xf32> -> vector<128x128xf32>
      %15 = arith.addf %11, %14 : vector<128x128xf32>
      %c0_8 = arith.constant 0 : index
      %c0_9 = arith.constant 0 : index
      %16 = vector.load %arg8[%c0_8, %c0_9] : memref<128x128xf32, #tpu.memory_space<vmem>>, vector<128x128xf32>
      tpu.vector_store %arg8[%c0_8, %c0_9], %15 {strides = array<i32>} : memref<128x128xf32, #tpu.memory_space<vmem>>, vector<128x128xf32>,
    } else {
    }
    %c2_i32 = arith.constant 2 : i32
    %8 = arith.cmpi eq, %arg1, %c2_i32 : i32
    %9 = arith.extui %8 : i1 to i32
    %c0_i32_2 = arith.constant 0 : i32
    %10 = arith.cmpi ne, %9, %c0_i32_2 : i32
    scf.if %10 {
      %c0 = arith.constant 0 : index
      %c0_3 = arith.constant 0 : index
      %11 = vector.load %arg8[%c0, %c0_3] : memref<128x128xf32, #tpu.memory_space<vmem>>, vector<128x128xf32>
      %c0_4 = arith.constant 0 : index
      %c0_5 = arith.constant 0 : index
      %12 = vector.load %arg6[%c0_4, %c0_5] : memref<1x128xf32, #tpu.memory_space<vmem>>, vector<1x128xf32>
      %13 = vector.broadcast %12 : vector<1x128xf32> to vector<128x128xf32>
      %14 = arith.addf %11, %13 : vector<128x128xf32>
      %15 = tpu.iota {dimensions = array<i32: 1>} : vector<128x128xi32>
      %c7_i32 = arith.constant 7 : i32
      %16 = vector.broadcast %c7_i32 : i32 to vector<128x128xi32>
      %17 = arith.cmpi slt, %15, %16 : vector<128x128xi32>
      %cst = arith.constant -1.000000e+30 : f32
      %18 = vector.broadcast %cst : f32 to vector<128x128xf32>
      %19 = arith.select %17, %14, %18 : vector<128x128xi1>, vector<128x128xf32>
      %cst_6 = arith.constant dense<0xFF800000> : vector<128xf32>
      %20 = vector.multi_reduction <maximumf>, %19, %cst_6 [1] : vector<128x128xf32> to vector<128xf32>
      %21 = vector.shape_cast %20 : vector<128xf32> to vector<128x1xf32>
      %22 = vector.broadcast %21 : vector<128x1xf32> to vector<128x128xf32>
      %23 = arith.subf %19, %22 : vector<128x128xf32>
      %24 = math.exp %23 : vector<128x128xf32>
      %cst_7 = arith.constant dense<0.000000e+00> : vector<128xf32>
      %25 = vector.multi_reduction <add>, %24, %cst_7 [1] : vector<128x128xf32> to vector<128xf32>
      %26 = vector.shape_cast %25 : vector<128xf32> to vector<128x1xf32>
      %27 = math.log %26 : vector<128x1xf32>
      %28 = vector.broadcast %27 : vector<128x1xf32> to vector<128x128xf32>
      %29 = arith.subf %23, %28 : vector<128x128xf32>
      %c0_8 = arith.constant 0 : index
      %c0_9 = arith.constant 0 : index
      %30 = vector.load %arg7[%c0_8, %c0_9] : memref<128x128xf32, #tpu.memory_space<vmem>>, vector<128x128xf32>
      tpu.vector_store %arg7[%c0_8, %c0_9], %29 {strides = array<i32>} : memref<128x128xf32, #tpu.memory_space<vmem>>, vector<128x128xf32>,
    } else {
    }
    return
  }
  func.func @transform_0(%arg0: i32, %arg1: i32, %arg2: memref<12xi32, #tpu.memory_space<smem>>, %arg3: memref<4xi32, #tpu.memory_space<smem>>) -> (i32, i32) {
    %c3_i32 = arith.constant 3 : i32
    %0 = arith.muli %arg0, %c3_i32 : i32
    %1 = arith.addi %0, %arg1 : i32
    %2 = arith.index_cast %1 : i32 to index
    %3 = memref.load %arg2[%2] : memref<12xi32, #tpu.memory_space<smem>>
    %c0_i32 = arith.constant 0 : i32
    return %arg0, %3 : i32, i32
  }
  func.func @transform_1(%arg0: i32, %arg1: i32, %arg2: memref<12xi32, #tpu.memory_space<smem>>, %arg3: memref<4xi32, #tpu.memory_space<smem>>) -> (i32, i32) {
    %c3_i32 = arith.constant 3 : i32
    %0 = arith.muli %arg0, %c3_i32 : i32
    %1 = arith.addi %0, %arg1 : i32
    %2 = arith.index_cast %1 : i32 to index
    %3 = memref.load %arg2[%2] : memref<12xi32, #tpu.memory_space<smem>>
    %c0_i32 = arith.constant 0 : i32
    %c0_i32_0 = arith.constant 0 : i32
    return %3, %c0_i32 : i32, i32
  }
  func.func @transform_2(%arg0: i32, %arg1: i32, %arg2: memref<12xi32, #tpu.memory_space<smem>>, %arg3: memref<4xi32, #tpu.memory_space<smem>>) -> (i32, i32) {
    %c0_i32 = arith.constant 0 : i32
    %c0_i32_0 = arith.constant 0 : i32
    %c0_i32_1 = arith.constant 0 : i32
    return %c0_i32, %c0_i32_0 : i32, i32
  }
  func.func @transform_3(%arg0: i32, %arg1: i32, %arg2: memref<12xi32, #tpu.memory_space<smem>>, %arg3: memref<4xi32, #tpu.memory_space<smem>>) -> (i32, i32) {
    %c0_i32 = arith.constant 0 : i32
    %c0_i32_0 = arith.constant 0 : i32
    return %arg0, %c0_i32 : i32, i32
  }
}

</mosaic_0001>

<bundles_post_ra>
// kernel: gcn_forward.4
= control target key start
LH: loop header
LB: loop body
LE: loop exit
PB: predicated region body
PF: predicated region fallthrough
CT: control target
= control target key end

     0   :  { %s605_s9 = smov 0   ;;  %s653_s0 = inlined_call_operand.vmem [shape: bf16[512,128], index: 0, kind: input, shape index: {}]   ;;  %s654_s1 = inlined_call_operand.vmem [shape: bf16[128,128], index: 1, kind: input, shape index: {}]   ;;  %s655_s2 = inlined_call_operand.vmem [shape: bf16[512,128], index: 2, kind: output, shape index: {}]  }
   0x1 LB: > { %s412_s10 = sadd.s32 4294967295, %s588_s9   ;;  %p416_p0 = scmp.ge.s32.totalorder %s588_s9, 1  ;;  %s588_s9 = sphi %s605_s9, %s12_s9  }
   0x2   : > { %p113_p1 = scmp.lt.s32.totalorder %s588_s9, 5 }
   0x4   : > { %p114_p2 = pnand %p416_p0, %p113_p1 }
   0x5   : > { %s417_s19 = sshll.u32 (!%p114_p2), %s412_s10, 4 }
   0x6   : > { %117 = sbr.rel (%p114_p2) target bundleno = 204 (0xcc), region = 28  ;;  %p136_p3 = scmp.lt.s32.totalorder (!%p114_p2), %s417_s19, 63 }
   0xb   : > { %v502_v0 = vld [vmem:[%s654_s1 + $0x38] sm:$0xff]  ;;  %v501_v1 = vld [vmem:[%s654_s1 + $0x30] sm:$0xff]  ;;  %v500_v2 = vld [vmem:[%s654_s1 + $0x28] sm:$0xff]  ;;  %s657_s19 = smov (!%p136_p3, %s417_s19), 63 }
   0xc   : > { %275 = vmatpush.bf16.msra.mxu0 %v502_v0  ;;  %550 = vmatpush.bf16.msra.mxu1 %v502_v0  ;;  %v499_v3 = vld [vmem:[%s654_s1 + $0x20] sm:$0xff]  ;;  %v498_v4 = vld [vmem:[%s654_s1 + $0x18] sm:$0xff]  ;;  %v497_v5 = vld [vmem:[%s654_s1 + $0x10] sm:$0xff]  ;;  %s418_s26 = sshll.u32 %s657_s19, 2 }
   0xd   : > { %551 = vmatpush.bf16.msra.mxu2 %v502_v0  ;;  %552 = vmatpush.bf16.msra.mxu3 %v502_v0  ;;  %v496_v6 = vld [vmem:[%s654_s1 + $0x8] sm:$0xff]  ;;  %v495_v7 = vld [vmem:[%s654_s1] sm:$0xff]  ;;  %s139_s3 = scalar_lea.vmem %s653_s0, %s418_s26  ;;  %s145_s6 = scalar_lea.vmem %s655_s2, %s418_s26 }
   0xe   : > { %v487_v8 = vld [vmem:[%s139_s3] sm:$0xff]  ;;  %v489_v9 = vld [vmem:[%s139_s3 + $0x10] sm:$0xff]  ;;  %v488_v12 = vld [vmem:[%s139_s3 + $0x8] sm:$0xff] }
   0xf   : > { %v491_v10 = vld [vmem:[%s139_s3 + $0x20] sm:$0xff]  ;;  %v493_v11 = vld [vmem:[%s139_s3 + $0x30] sm:$0xff]  ;;  %v490_v13 = vld [vmem:[%s139_s3 + $0x18] sm:$0xff] }
  0x10   : > { %276 = vmatpush.bf16.msra.mxu0 %v501_v1  ;;  %553 = vmatpush.bf16.msra.mxu1 %v501_v1  ;;  %v492_v14 = vld [vmem:[%s139_s3 + $0x28] sm:$0xff]  ;;  %v494_v15 = vld [vmem:[%s139_s3 + $0x38] sm:$0xff] }
  0x11   : > { %554 = vmatpush.bf16.msra.mxu2 %v501_v1  ;;  %555 = vmatpush.bf16.msra.mxu3 %v501_v1 }
  0x14   : > { %277 = vmatpush.bf16.msra.mxu0 %v500_v2  ;;  %556 = vmatpush.bf16.msra.mxu1 %v500_v2 }
  0x15   : > { %557 = vmatpush.bf16.msra.mxu2 %v500_v2  ;;  %558 = vmatpush.bf16.msra.mxu3 %v500_v2 }
  0x18   : > { %278 = vmatpush.bf16.msra.mxu0 %v499_v3  ;;  %559 = vmatpush.bf16.msra.mxu1 %v499_v3 }
  0x19   : > { %560 = vmatpush.bf16.msra.mxu2 %v499_v3  ;;  %561 = vmatpush.bf16.msra.mxu3 %v499_v3 }
  0x1c   : > { %279 = vmatpush.bf16.msra.mxu0 %v498_v4  ;;  %562 = vmatpush.bf16.msra.mxu1 %v498_v4 }
  0x1d   : > { %563 = vmatpush.bf16.msra.mxu2 %v498_v4  ;;  %564 = vmatpush.bf16.msra.mxu3 %v498_v4 }
  0x20   : > { %280 = vmatpush.bf16.msra.mxu0 %v497_v5  ;;  %565 = vmatpush.bf16.msra.mxu1 %v497_v5 }
  0x21   : > { %566 = vmatpush.bf16.msra.mxu2 %v497_v5  ;;  %567 = vmatpush.bf16.msra.mxu3 %v497_v5 }
  0x24   : > { %281 = vmatpush.bf16.msra.mxu0 %v496_v6  ;;  %568 = vmatpush.bf16.msra.mxu1 %v496_v6 }
  0x25   : > { %569 = vmatpush.bf16.msra.mxu2 %v496_v6  ;;  %570 = vmatpush.bf16.msra.mxu3 %v496_v6 }
  0x28   : > { %282 = vmatpush.bf16.msra.mxu0 %v495_v7  ;;  %571 = vmatpush.bf16.msra.mxu1 %v495_v7 }
  0x29   : > { %572 = vmatpush.bf16.msra.mxu2 %v495_v7  ;;  %573 = vmatpush.bf16.msra.mxu3 %v495_v7 }
  0x2b   : > { %283 = vmatmul.bf16.vlgmr.msra.gmra.mxu0 %v487_v8  ;;  %293 = vmatmul.bf16.vlgmr.msra.gmra.mxu1 %v489_v9 }
  0x2c   : > { %303 = vmatmul.bf16.vlgmr.msra.gmra.mxu2 %v491_v10  ;;  %313 = vmatmul.bf16.vlgmr.msra.gmra.mxu3 %v493_v11 }
  0x3b   : > { %288 = vmatmul.bf16.gmra.mxu0 %v488_v12  ;;  %298 = vmatmul.bf16.gmra.mxu1 %v490_v13 }
  0x3c   : > { %308 = vmatmul.bf16.gmra.mxu2 %v492_v14  ;;  %318 = vmatmul.bf16.gmra.mxu3 %v494_v15 }
  0xa8   : > { %v284_v16 = vpop.f32.mrf.mxu0  ;;  %v294_v17 = vpop.f32.mrf.mxu1 }
  0xaf   : > { %v304_v18 = vpop.f32.mrf.mxu2  ;;  %v314_v19 = vpop.f32.mrf.mxu3 }
  0xb0   : > { %v286_v20 = vpop.f32.mrf.mxu0  ;;  %v296_v21 = vpop.f32.mrf.mxu1 }
  0xb1   : > { %v506_v22 = vpack.c.bf16 %v286_v20, %v284_v16  ;;  %v516_v23 = vpack.c.bf16 %v296_v21, %v294_v17 }
  0xb3   : > { %507 = vst [vmem:[%s145_s6] sm:$0xff] %v506_v22  }
  0xb4   : > { %544 = vst [vmem:[%s145_s6 + $0x10] sm:$0xff] %v516_v23  }
  0xb7   : > { %v306_v24 = vpop.f32.mrf.mxu2  ;;  %v316_v25 = vpop.f32.mrf.mxu3 }
  0xb8   : > { %v526_v26 = vpack.c.bf16 %v306_v24, %v304_v18  ;;  %v536_v27 = vpack.c.bf16 %v316_v25, %v314_v19  ;;  %v289_v28 = vpop.f32.mrf.mxu0  ;;  %v299_v29 = vpop.f32.mrf.mxu1 }
  0xba   : > { %546 = vst [vmem:[%s145_s6 + $0x20] sm:$0xff] %v526_v26  }
  0xbb   : > { %548 = vst [vmem:[%s145_s6 + $0x30] sm:$0xff] %v536_v27  }
  0xbf   : > { %v309_v30 = vpop.f32.mrf.mxu2  ;;  %v319_v31 = vpop.f32.mrf.mxu3 }
  0xc0   : > { %v291_v32 = vpop.f32.mrf.mxu0  ;;  %v301_v33 = vpop.f32.mrf.mxu1 }
  0xc1   : > { %v511_v34 = vpack.c.bf16 %v291_v32, %v289_v28  ;;  %v521_v35 = vpack.c.bf16 %v301_v33, %v299_v29 }
  0xc3   : > { %543 = vst [vmem:[%s145_s6 + $0x8] sm:$0xff] %v511_v34  }
  0xc4   : > { %545 = vst [vmem:[%s145_s6 + $0x18] sm:$0xff] %v521_v35  }
  0xc7   : > { %v311_v36 = vpop.f32.mrf.mxu2  ;;  %v321_v37 = vpop.f32.mrf.mxu3 }
  0xc8   : > { %v531_v38 = vpack.c.bf16 %v311_v36, %v309_v30  ;;  %v541_v39 = vpack.c.bf16 %v321_v37, %v319_v31 }
  0xca   : > { %547 = vst [vmem:[%s145_s6 + $0x28] sm:$0xff] %v531_v38  }
  0xcb   : > { %549 = vst [vmem:[%s145_s6 + $0x38] sm:$0xff] %v541_v39  }
  0xcc PF: > { %s12_s9 = sadd.s32 1, %s588_s9  }
  0xcd   : > { %p9_p4 = scmp.ge.s32.totalorder %s12_s9, 6  }
  0xcf   :  { %11 = sbr.rel (!%p9_p4) target bundleno = 1 (0x1), region = 58 }

// kernel: gcn_forward.5
= control target key start
LH: loop header
LB: loop body
LE: loop exit
PB: predicated region body
PF: predicated region fallthrough
CT: control target
= control target key end

     0   :  { %s1089_s24 = smov [#allocation4]   ;;  %s1090_s25 = smov [#allocation5]   ;;  %s1311_s0 = inlined_call_operand.vmem [shape: s32[12], index: 0, kind: input, shape index: {}]   ;;  %s1312_s2 = inlined_call_operand.hbm [shape: bf16[512,512], index: 2, kind: input, shape index: {}]   ;;  %s1313_s3 = inlined_call_operand.vmem [shape: bf16[512,128], index: 3, kind: input, shape index: {}]   ;;  %s1314_s4 = inlined_call_operand.vmem [shape: f32[1,128], index: 4, kind: input, shape index: {}]   ;;  %s1315_s5 = inlined_call_operand.vmem [shape: bf16[512,128], index: 5, kind: output, shape index: {}]   ;;  %s1316_s1 = inlined_call_operand.vmem [shape: s32[4], index: 1, kind: input, shape index: {}]  }
   0x1   :  { %s11_s20 = sshll.u32 %s1311_s0, 4  ;;  %s16_s23 = sshll.u32 %s1316_s1, 4  ;;  %s12_s20 = int_to_ptr.vmem [resolvable:$true] %s11_s20  ;;  %s17_s23 = int_to_ptr.vmem [resolvable:$true] %s16_s23 }
   0x2   :  { %14 = dma.vmem_to_smem %s12_s20, 16, %s1089_s24, [#allocation3] }
   0x3   :  { %19 = dma.vmem_to_smem %s17_s23, 16, %s1090_s25, [#allocation3] }
   0x4   :  { %1051 = dma.done.wait [#allocation3], 32 }
   0x5   :  { %1052 = vsyncadd [#allocation3], 4294967264 }
   0x6   :  { %22 = sfence }
   0x7   :  { %23 = vsyncpa [#allocation7], 0 }
   0x8   :  { %25 = vsyncpa [#allocation7 + $0x1], 0  ;;  %s1131_s26 = smov 0   ;;  %s1133_s27 = smov 0  }
   0x9   :  { %s1135_s0 = smov 0   ;;  %s1137_s28 = smov 0  }
   0xa   :  { %s1139_s1 = smov 0   ;;  %s1141_s29 = smov 0  }
   0xb   :  { %s1143_s30 = smov 0   ;;  %s1145_s6 = smov 0  }
   0xc LB: > { %s40_s7 = sadd.s32 1, %s1079_s29  ;;  %s43_s8 = sadd.s32 1, %s1083_s30  ;;  %s1087_s6 = sphi %s1145_s6, %s31_s6   ;;  %s1083_s30 = sphi %s1143_s30, %s1331_s30   ;;  %s1079_s29 = sphi %s1141_s29, %s1330_s29   ;;  %s1075_s1 = sphi %s1139_s1, %s1329_s1   ;;  %s1071_s28 = sphi %s1137_s28, %s1328_s28   ;;  %s1067_s0 = sphi %s1135_s0, %s1327_s0   ;;  %s1063_s27 = sphi %s1133_s27, %s1326_s27   ;;  %s1059_s26 = sphi %s1131_s26, %s1325_s26  }
   0xd   : > { %p41_p0 = scmp.ge.s32.totalorder %s40_s7, 3  ;;  %s712_s9 = sadd.s32 4294967295, %s1087_s6  }
   0xe   : > { %s47_s10 = smul.u32 3, %s1083_s30  ;;  %p65_p2 = scmp.ne.s32.totalorder %s1067_s0, %s1063_s27 }
   0xf   : > { %s1333_s8 = smov (!%p41_p0, %s43_s8), %s1083_s30  ;;  %s1335_s7 = smov (%p41_p0, %s40_s7), 0 }
  0x10   : > { %p45_p1 = scmp.ge.s32.totalorder %s1333_s8, 4  ;;  %p66_p3 = scmp.eq.s32.totalorder %s1087_s6, 0 }
  0x11   : > { %p71_p4 = scmp.ne.s32.totalorder %s1063_s27, %s1059_s26  ;;  %s48_s11 = sadd.s32 %s1079_s29, %s47_s10 }
  0x12   : > { %s1337_s8 = smov (%p45_p1, %s1333_s8), 0  ;;  %p72_p5 = scmp.eq.s32.totalorder %s712_s9, 0 }
  0x13   : > { %1318 = sst [smem:[#allocation12_spill]] %s1337_s8  ;;  %s50_s13 = smul.u32 3, %s1337_s8 }
  0x14   : > { %s49_s12 = sld [smem:[#allocation4 + %s48_s11]]  ;;  %p1184_p6 = por %p72_p5, %p71_p4 }
  0x15   : > { %s51_s15 = sadd.s32 %s50_s13, %s1335_s7  ;;  %p1189_p7 = por %p66_p3, %p65_p2 }
  0x16   : > { %s52_s17 = sld [smem:[#allocation4 + %s51_s15]]  ;;  %s177_s18 = sand.u32 1, %s1067_s0  }
  0x17   : > { %p893_p8 = scmp.lt.s32.totalorder %s1087_s6, 12  ;;  %s53_s19 = ssub.s32 %s1083_s30, %s1337_s8 }
  0x18   : > { %s716_s20 = sshll.u32 %s177_s18, 6  ;;  %s1339_s11 = smov (!%p1189_p7, %s48_s11), 0 }
  0x19   : > { %s883_s21 = scalar_select %p1189_p7, [#allocation4], [#allocation8] }
  0x1a   : > { %s58_s23 = sadd.s32 1, %s1067_s0  ;;  %p1204_p10 = pnand %p893_p8, %p1189_p7 }
  0x1b   : > { %s1341_s21 = smov (!%p893_p8, %s883_s21), [#allocation9]  ;;  %s1343_s11 = smov (!%p893_p8, %s1339_s11), 0 }
  0x1c   : > { %s54_s22 = ssub.s32 %s49_s12, %s52_s17  ;;  %s184_s9 = sld [smem:[%s1341_s21 + %s1343_s11]] }
  0x1d   : > { %s55_s24 = sor.u32 %s54_s22, %s53_s19  ;;  %s181_s10 = scalar_lea.vmem [#allocation6], %s716_s20 }
  0x1e   : > { %p56_p9 = scmp.eq.s32.totalorder %s55_s24, 0  ;;  %s1211_s13 = sshll.u32 %s181_s10, 4  ;;  %s195_s13 = int_to_ptr.vmem [resolvable:$true] %s1211_s13 }
  0x1f   : > { %p720_p11 = scmp.ge.s32.totalorder %s1087_s6, 1  ;;  %s795_s15 = sshll.u32 %s1083_s30, 6 }
  0x20   : > { %s1209_s26 = scalar_select %p56_p9, %s1067_s0, %s58_s23  }
  0x21   : > { %p217_p12 = scmp.lt.s32.totalorder %s1087_s6, 13  ;;  %s178_s20 = scalar_lea.sflag [#allocation7], %s177_s18 }
  0x22   : > { %s189_s16 = sadd.s32 %s795_s15, %s184_s9  ;;  %p993_p1 = pneg %p1204_p10 }
  0x23   : > { %p1217_p13 = pnand %p720_p11, %p217_p12  ;;  %s719_s17 = sshll.u32 %s189_s16, 2 }
  0x24   : > { %s191_s23 = scalar_lea.hbm %s1312_s2, %s719_s17  ;;  %s996_s9 = scalar_lea.hbm %s1312_s2, 1024 }
  0x25   : > { %s192_s11 = sshll.u32 %s191_s23, 4  ;;  %s193_s11 = int_to_ptr.hbm [resolvable:$true] %s192_s11 }
  0x26   : > { %s989_s21 = sshra.s32 %s193_s11, 4  ;;  %s990_s21 = int_to_ptr.hbm [resolvable:$true] %s989_s21 }
  0x27   : > { %s991_s24 = scalar_lea.hbm %s990_s21, 64  ;;  %p997_p4 = scmp.lt.s32.totalorder %s990_s21, %s1312_s2 }
  0x28   : > { %p992_p0 = scmp.ne.s32.totalorder %s990_s21, %s991_s24  ;;  %p998_p5 = scmp.lt.s32.totalorder %s996_s9, %s991_s24 }
  0x2a   : > { %p994_p2 = pnand %p993_p1, %p992_p0  ;;  %p999_p7 = por %p998_p5, %p997_p4 }
  0x2c   : > { %p995_p3 = pneg %p994_p2 }
  0x2e   : > { %p1000_p8 = pnand %p999_p7, %p995_p3 }
  0x30   : > { %1003 = shalt.err (!%p1000_p8)
}
  0x31   : > { %s1091_s18 = smov 256   ;;  %s1092_s17 = smov 64  }
  0x32   : > { %s1093_s19 = smov 4   ;;  %221 = sbr.rel (%p1217_p13) target bundleno = 317 (0x13d), region = 32 }
  0x33   : > { %892 = dma.hbm_to_vmem [thread:$0]  (!%p1204_p10), %s193_s11, 1024, %s195_s13, %s178_s20, %s1091_s18, %s1092_s17, %s1093_s19  }
  0x34   : > { %s223_s8 = sand.u32 (!%p1217_p13), 1, %s1063_s27  }
  0x35   : > { %s721_s22 = sshll.u32 (!%p1217_p13), %s223_s8, 6  ;;  %s224_s23 = scalar_lea.sflag (!%p1217_p13), [#allocation7], %s223_s8 }
  0x36   : > { %s1237_s10 = scalar_lea.vmem (!%p1217_p13), [#allocation6], %s721_s22 }
  0x37   : > { %1054 = dma.done.wait (%p1184_p6), %s224_s23, 1024  }
  0x38   : > { %1056 = vsyncadd (%p1184_p6), %s224_s23, 4294966272  ;;  %s263_s25 = smul.u32 3, %s1075_s1  ;;  %s724_s13 = sshll.u32 %s1075_s1, 4 }
  0x39   : > { %p276_p9 = scmp.lt.s32.totalorder %s724_s13, 63  ;;  %p726_p6 = scmp.ne.s32.totalorder %s1071_s28, 0 }
  0x3a   : > { %s264_s12 = sadd.s32 %s1071_s28, %s263_s25 }
  0x3b   : > { %s265_s11 = sld [smem:[#allocation4 + %s264_s12]]  ;;  %s1345_s13 = smov (!%p276_p9, %s724_s13), 63 }
  0x3c   : > { %s725_s20 = sshll.u32 %s1345_s13, 2 }
  0x3d   : > { %s1249_s9 = scalar_lea.vmem %s1315_s5, %s725_s20 }
  0x41   : > { %s722_s15 = sshll.u32 %s265_s11, 4 }
  0x42   : > { %p267_p10 = scmp.lt.s32.totalorder %s722_s15, 63  ;;  %284 = sbr.rel (%p726_p6) target bundleno = 88 (0x58), region = 40 }
  0x44   : > { %s1347_s15 = smov (!%p267_p10, %s722_s15), 63 }
  0x45   : > { %s723_s14 = sshll.u32 %s1347_s15, 2 }
  0x46   : > { %s1254_s17 = scalar_lea.vmem %s1313_s3, %s723_s14 }
  0x47   : > { %v1094_v0 = vmov 0.0  }
  0x48   : > { %285 = vst [vmem:[#allocation2 + $0x30] sm:$0xff] %v1094_v0 }
  0x49   : > { %286 = vst [vmem:[#allocation2] sm:$0xff] %v1094_v0 }
  0x4a   : > { %287 = vst [vmem:[#allocation2 + $0x58] sm:$0xff] %v1094_v0 }
  0x4b   : > { %288 = vst [vmem:[#allocation2 + $0x18] sm:$0xff] %v1094_v0 }
  0x4c   : > { %289 = vst [vmem:[#allocation2 + $0x50] sm:$0xff] %v1094_v0 }
  0x4d   : > { %290 = vst [vmem:[#allocation2 + $0x68] sm:$0xff] %v1094_v0 }
  0x4e   : > { %291 = vst [vmem:[#allocation2 + $0x8] sm:$0xff] %v1094_v0 }
  0x4f   : > { %292 = vst [vmem:[#allocation2 + $0x48] sm:$0xff] %v1094_v0 }
  0x50   : > { %293 = vst [vmem:[#allocation2 + $0x40] sm:$0xff] %v1094_v0 }
  0x51   : > { %294 = vst [vmem:[#allocation2 + $0x20] sm:$0xff] %v1094_v0 }
  0x52   : > { %295 = vst [vmem:[#allocation2 + $0x10] sm:$0xff] %v1094_v0 }
  0x53   : > { %296 = vst [vmem:[#allocation2 + $0x38] sm:$0xff] %v1094_v0 }
  0x54   : > { %297 = vst [vmem:[#allocation2 + $0x60] sm:$0xff] %v1094_v0 }
  0x55   : > { %298 = vst [vmem:[#allocation2 + $0x70] sm:$0xff] %v1094_v0 }
  0x56   : > { %299 = vst [vmem:[#allocation2 + $0x78] sm:$0xff] %v1094_v0 }
  0x57   : > { %300 = vst [vmem:[#allocation2 + $0x28] sm:$0xff] %v1094_v0 }
  0x58 PF: > { %s301_s19 = sld [smem:[#allocation5 + %s1075_s1]] }
  0x5e   : > { %p727_p11 = scmp.ge.s32.totalorder %s1071_s28, %s301_s19 }
  0x60   : > { %305 = sbr.rel (%p727_p11) target bundleno = 294 (0x126), region = 44 }
  0x65   : > { %v811_v1 = vld [vmem:[%s1254_s17 + $0x38] sm:$0xff]  ;;  %v810_v2 = vld [vmem:[%s1254_s17 + $0x30] sm:$0xff]  ;;  %v809_v3 = vld [vmem:[%s1254_s17 + $0x28] sm:$0xff] }
  0x66   : > { %450 = vmatpush.bf16.msra.mxu0 %v811_v1  ;;  %859 = vmatpush.bf16.msra.mxu1 %v811_v1  ;;  %v808_v4 = vld [vmem:[%s1254_s17 + $0x20] sm:$0xff]  ;;  %v807_v5 = vld [vmem:[%s1254_s17 + $0x18] sm:$0xff]  ;;  %v806_v6 = vld [vmem:[%s1254_s17 + $0x10] sm:$0xff] }
  0x67   : > { %860 = vmatpush.bf16.msra.mxu2 %v811_v1  ;;  %861 = vmatpush.bf16.msra.mxu3 %v811_v1  ;;  %v805_v7 = vld [vmem:[%s1254_s17 + $0x8] sm:$0xff]  ;;  %v804_v8 = vld [vmem:[%s1254_s17] sm:$0xff]  ;;  %v798_v10 = vld [vmem:[%s1237_s10 + $0x10] sm:$0xff] }
  0x68   : > { %v796_v9 = vld [vmem:[%s1237_s10] sm:$0xff]  ;;  %v802_v12 = vld [vmem:[%s1237_s10 + $0x30] sm:$0xff]  ;;  %v797_v13 = vld [vmem:[%s1237_s10 + $0x8] sm:$0xff] }
  0x69   : > { %v800_v11 = vld [vmem:[%s1237_s10 + $0x20] sm:$0xff]  ;;  %v799_v14 = vld [vmem:[%s1237_s10 + $0x18] sm:$0xff]  ;;  %v801_v15 = vld [vmem:[%s1237_s10 + $0x28] sm:$0xff] }
  0x6a   : > { %451 = vmatpush.bf16.msra.mxu0 %v810_v2  ;;  %862 = vmatpush.bf16.msra.mxu1 %v810_v2  ;;  %v803_v16 = vld [vmem:[%s1237_s10 + $0x38] sm:$0xff]  ;;  %v306_v17 = vld [vmem:[#allocation2 + $0x30] sm:$0xff]  ;;  %v314_v23 = vld [vmem:[#allocation2 + $0x40] sm:$0xff] }
  0x6b   : > { %863 = vmatpush.bf16.msra.mxu2 %v810_v2  ;;  %864 = vmatpush.bf16.msra.mxu3 %v810_v2  ;;  %v310_v18 = vld [vmem:[#allocation2 + $0x50] sm:$0xff]  ;;  %v318_v24 = vld [vmem:[#allocation2 + $0x60] sm:$0xff]  ;;  %v311_v26 = vld [vmem:[#allocation2 + $0x68] sm:$0xff] }
  0x6c   : > { %v307_v25 = vld [vmem:[#allocation2] sm:$0xff]  ;;  %v319_v36 = vld [vmem:[#allocation2 + $0x70] sm:$0xff]  ;;  %v308_v37 = vld [vmem:[#allocation2 + $0x58] sm:$0xff] }
  0x6d   : > { %v315_v35 = vld [vmem:[#allocation2 + $0x20] sm:$0xff]  ;;  %v312_v38 = vld [vmem:[#allocation2 + $0x8] sm:$0xff]  ;;  %v316_v47 = vld [vmem:[#allocation2 + $0x10] sm:$0xff] }
  0x6e   : > { %452 = vmatpush.bf16.msra.mxu0 %v809_v3  ;;  %865 = vmatpush.bf16.msra.mxu1 %v809_v3  ;;  %v320_v48 = vld [vmem:[#allocation2 + $0x78] sm:$0xff]  ;;  %v313_v50 = vld [vmem:[#allocation2 + $0x48] sm:$0xff] }
  0x6f   : > { %866 = vmatpush.bf16.msra.mxu2 %v809_v3  ;;  %867 = vmatpush.bf16.msra.mxu3 %v809_v3  ;;  %v309_v49 = vld [vmem:[#allocation2 + $0x18] sm:$0xff]  ;;  %v321_v60 = vld [vmem:[#allocation2 + $0x28] sm:$0xff] }
  0x70   : > { %v317_v59 = vld [vmem:[#allocation2 + $0x38] sm:$0xff] }
  0x72   : > { %453 = vmatpush.bf16.msra.mxu0 %v808_v4  ;;  %868 = vmatpush.bf16.msra.mxu1 %v808_v4 }
  0x73   : > { %869 = vmatpush.bf16.msra.mxu2 %v808_v4  ;;  %870 = vmatpush.bf16.msra.mxu3 %v808_v4 }
  0x76   : > { %454 = vmatpush.bf16.msra.mxu0 %v807_v5  ;;  %871 = vmatpush.bf16.msra.mxu1 %v807_v5 }
  0x77   : > { %872 = vmatpush.bf16.msra.mxu2 %v807_v5  ;;  %873 = vmatpush.bf16.msra.mxu3 %v807_v5 }
  0x7a   : > { %455 = vmatpush.bf16.msra.mxu0 %v806_v6  ;;  %874 = vmatpush.bf16.msra.mxu1 %v806_v6 }
  0x7b   : > { %875 = vmatpush.bf16.msra.mxu2 %v806_v6  ;;  %876 = vmatpush.bf16.msra.mxu3 %v806_v6 }
  0x7e   : > { %456 = vmatpush.bf16.msra.mxu0 %v805_v7  ;;  %877 = vmatpush.bf16.msra.mxu1 %v805_v7 }
  0x7f   : > { %878 = vmatpush.bf16.msra.mxu2 %v805_v7  ;;  %879 = vmatpush.bf16.msra.mxu3 %v805_v7 }
  0x82   : > { %457 = vmatpush.bf16.msra.mxu0 %v804_v8  ;;  %880 = vmatpush.bf16.msra.mxu1 %v804_v8 }
  0x83   : > { %881 = vmatpush.bf16.msra.mxu2 %v804_v8  ;;  %882 = vmatpush.bf16.msra.mxu3 %v804_v8 }
  0x85   : > { %458 = vmatmul.bf16.vlgmr.msra.gmra.mxu0 %v796_v9  ;;  %468 = vmatmul.bf16.vlgmr.msra.gmra.mxu1 %v798_v10 }
  0x86   : > { %478 = vmatmul.bf16.vlgmr.msra.gmra.mxu2 %v800_v11  ;;  %488 = vmatmul.bf16.vlgmr.msra.gmra.mxu3 %v802_v12 }
  0x95   : > { %463 = vmatmul.bf16.gmra.mxu0 %v797_v13  ;;  %473 = vmatmul.bf16.gmra.mxu1 %v799_v14 }
  0x96   : > { %483 = vmatmul.bf16.gmra.mxu2 %v801_v15  ;;  %493 = vmatmul.bf16.gmra.mxu3 %v803_v16 }
 0x102   : > { %v459_v19 = vpop.f32.mrf.mxu0  ;;  %v469_v20 = vpop.f32.mrf.mxu1 }
 0x103   : > { %v499_v21 = vadd.f32 %v459_v19, %v306_v17  ;;  %v503_v22 = vadd.f32 %v469_v20, %v310_v18 }
 0x105   : > { %515 = vst [vmem:[#allocation2 + $0x30] sm:$0xff] %v499_v21 }
 0x106   : > { %519 = vst [vmem:[#allocation2 + $0x50] sm:$0xff] %v503_v22 }
 0x109   : > { %v479_v27 = vpop.f32.mrf.mxu2  ;;  %v489_v28 = vpop.f32.mrf.mxu3 }
 0x10a   : > { %v507_v29 = vadd.f32 %v479_v27, %v314_v23  ;;  %v511_v30 = vadd.f32 %v489_v28, %v318_v24  ;;  %v461_v31 = vpop.f32.mrf.mxu0  ;;  %v471_v32 = vpop.f32.mrf.mxu1 }
 0x10b   : > { %v500_v33 = vadd.f32 %v461_v31, %v307_v25  ;;  %v504_v34 = vadd.f32 %v471_v32, %v311_v26 }
 0x10c   : > { %523 = vst [vmem:[#allocation2 + $0x40] sm:$0xff] %v507_v29 }
 0x10d   : > { %527 = vst [vmem:[#allocation2 + $0x60] sm:$0xff] %v511_v30 }
 0x10e   : > { %516 = vst [vmem:[#allocation2] sm:$0xff] %v500_v33 }
 0x10f   : > { %520 = vst [vmem:[#allocation2 + $0x68] sm:$0xff] %v504_v34 }
 0x111   : > { %v481_v39 = vpop.f32.mrf.mxu2  ;;  %v491_v40 = vpop.f32.mrf.mxu3 }
 0x112   : > { %v508_v41 = vadd.f32 %v481_v39, %v315_v35  ;;  %v512_v42 = vadd.f32 %v491_v40, %v319_v36  ;;  %v464_v43 = vpop.f32.mrf.mxu0  ;;  %v474_v44 = vpop.f32.mrf.mxu1 }
 0x113   : > { %v501_v45 = vadd.f32 %v464_v43, %v308_v37  ;;  %v505_v46 = vadd.f32 %v474_v44, %v312_v38 }
 0x114   : > { %524 = vst [vmem:[#allocation2 + $0x20] sm:$0xff] %v508_v41 }
 0x115   : > { %528 = vst [vmem:[#allocation2 + $0x70] sm:$0xff] %v512_v42 }
 0x116   : > { %517 = vst [vmem:[#allocation2 + $0x58] sm:$0xff] %v501_v45 }
 0x117   : > { %521 = vst [vmem:[#allocation2 + $0x8] sm:$0xff] %v505_v46 }
 0x119   : > { %v484_v51 = vpop.f32.mrf.mxu2  ;;  %v494_v52 = vpop.f32.mrf.mxu3 }
 0x11a   : > { %v509_v53 = vadd.f32 %v484_v51, %v316_v47  ;;  %v513_v54 = vadd.f32 %v494_v52, %v320_v48  ;;  %v466_v55 = vpop.f32.mrf.mxu0  ;;  %v476_v56 = vpop.f32.mrf.mxu1 }
 0x11b   : > { %v502_v57 = vadd.f32 %v466_v55, %v309_v49  ;;  %v506_v58 = vadd.f32 %v476_v56, %v313_v50 }
 0x11c   : > { %525 = vst [vmem:[#allocation2 + $0x10] sm:$0xff] %v509_v53 }
 0x11d   : > { %529 = vst [vmem:[#allocation2 + $0x78] sm:$0xff] %v513_v54 }
 0x11e   : > { %518 = vst [vmem:[#allocation2 + $0x18] sm:$0xff] %v502_v57 }
 0x11f   : > { %522 = vst [vmem:[#allocation2 + $0x48] sm:$0xff] %v506_v58 }
 0x121   : > { %v486_v61 = vpop.f32.mrf.mxu2  ;;  %v496_v62 = vpop.f32.mrf.mxu3 }
 0x122   : > { %v510_v63 = vadd.f32 %v486_v61, %v317_v59  ;;  %v514_v0 = vadd.f32 %v496_v62, %v321_v60 }
 0x124   : > { %526 = vst [vmem:[#allocation2 + $0x38] sm:$0xff] %v510_v63 }
 0x125   : > { %530 = vst [vmem:[#allocation2 + $0x28] sm:$0xff] %v514_v0 }
 0x126 PF: > { %p792_p12 = scmp.ne.s32.totalorder %s1071_s28, 2 }
 0x128   : > { %534 = sbr.rel (%p792_p12) target bundleno = 317 (0x13d), region = 48 }
 0x12d   : > { %v535_v1 = vld [vmem:[#allocation2 + $0x30] sm:$0xff]  ;;  %v536_v2 = vld [vmem:[#allocation2] sm:$0xff]  ;;  %v537_v4 = vld [vmem:[#allocation2 + $0x58] sm:$0xff] }
 0x12e   : > { %v964_v3 = vld [vmem:[%s1314_s4] ss:$0 sm:$0xff]  ;;  %v538_v5 = vld [vmem:[#allocation2 + $0x18] sm:$0xff]  ;;  %v539_v6 = vld [vmem:[#allocation2 + $0x50] sm:$0xff] }
 0x12f   : > { %v540_v7 = vld [vmem:[#allocation2 + $0x68] sm:$0xff]  ;;  %v555_v9 = vadd.f32 %v964_v3, %v535_v1  ;;  %v556_v10 = vadd.f32 %v964_v3, %v536_v2  ;;  %v557_v11 = vadd.f32 %v964_v3, %v537_v4  ;;  %v558_v12 = vadd.f32 %v964_v3, %v538_v5  ;;  %v543_v18 = vld [vmem:[#allocation2 + $0x40] sm:$0xff]  ;;  %v545_v24 = vld [vmem:[#allocation2 + $0x10] sm:$0xff] }
 0x130   : > { %v541_v8 = vld [vmem:[#allocation2 + $0x8] sm:$0xff]  ;;  %v559_v14 = vadd.f32 %v964_v3, %v539_v6  ;;  %v560_v15 = vadd.f32 %v964_v3, %v540_v7  ;;  %v544_v19 = vld [vmem:[#allocation2 + $0x20] sm:$0xff]  ;;  %v546_v25 = vld [vmem:[#allocation2 + $0x38] sm:$0xff]  ;;  %v563_v34 = vadd.f32 %v964_v3, %v543_v18  ;;  %v565_v40 = vadd.f32 %v964_v3, %v545_v24 }
 0x131   : > { %v542_v13 = vld [vmem:[#allocation2 + $0x48] sm:$0xff]  ;;  %v561_v16 = vadd.f32 %v964_v3, %v541_v8  ;;  %v571_v20 = vmax.f32 %v555_v9, 0.0  ;;  %v572_v21 = vmax.f32 %v556_v10, 0.0  ;;  %v573_v22 = vmax.f32 %v557_v11, 0.0  ;;  %v547_v30 = vld [vmem:[#allocation2 + $0x60] sm:$0xff]  ;;  %v548_v31 = vld [vmem:[#allocation2 + $0x70] sm:$0xff] }
 0x132   : > { %v562_v17 = vadd.f32 %v964_v3, %v542_v13  ;;  %v574_v23 = vmax.f32 %v558_v12, 0.0  ;;  %v575_v26 = vmax.f32 %v559_v14, 0.0  ;;  %v576_v27 = vmax.f32 %v560_v15, 0.0  ;;  %v549_v36 = vld [vmem:[#allocation2 + $0x78] sm:$0xff]  ;;  %v550_v37 = vld [vmem:[#allocation2 + $0x28] sm:$0xff] }
 0x133   : > { %v577_v28 = vmax.f32 %v561_v16, 0.0  ;;  %v815_v32 = vpack.c.bf16 %v572_v21, %v571_v20  ;;  %v564_v35 = vadd.f32 %v964_v3, %v544_v19  ;;  %v566_v41 = vadd.f32 %v964_v3, %v546_v25 }
 0x134   : > { %v578_v29 = vmax.f32 %v562_v17, 0.0  ;;  %v820_v33 = vpack.c.bf16 %v574_v23, %v573_v22  ;;  %v825_v38 = vpack.c.bf16 %v576_v27, %v575_v26  ;;  %v579_v42 = vmax.f32 %v563_v34, 0.0 }
 0x135   : > { %816 = vst [vmem:[%s1249_s9] sm:$0xff] %v815_v32   ;;  %v580_v43 = vmax.f32 %v564_v35, 0.0  ;;  %v567_v44 = vadd.f32 %v964_v3, %v547_v30  ;;  %v568_v45 = vadd.f32 %v964_v3, %v548_v31  ;;  %v581_v46 = vmax.f32 %v565_v40, 0.0 }
 0x136   : > { %v830_v39 = vpack.c.bf16 %v578_v29, %v577_v28  ;;  %852 = vst [vmem:[%s1249_s9 + $0x8] sm:$0xff] %v820_v33   ;;  %v582_v47 = vmax.f32 %v566_v41, 0.0  ;;  %v569_v48 = vadd.f32 %v964_v3, %v549_v36  ;;  %v570_v49 = vadd.f32 %v964_v3, %v550_v37 }
 0x137   : > { %853 = vst [vmem:[%s1249_s9 + $0x10] sm:$0xff] %v825_v38   ;;  %v835_v50 = vpack.c.bf16 %v580_v43, %v579_v42  ;;  %v583_v51 = vmax.f32 %v567_v44, 0.0  ;;  %v584_v52 = vmax.f32 %v568_v45, 0.0 }
 0x138   : > { %854 = vst [vmem:[%s1249_s9 + $0x18] sm:$0xff] %v830_v39   ;;  %v840_v53 = vpack.c.bf16 %v582_v47, %v581_v46  ;;  %v585_v54 = vmax.f32 %v569_v48, 0.0  ;;  %v586_v55 = vmax.f32 %v570_v49, 0.0 }
 0x139   : > { %855 = vst [vmem:[%s1249_s9 + $0x20] sm:$0xff] %v835_v50   ;;  %v845_v56 = vpack.c.bf16 %v584_v52, %v583_v51 }
 0x13a   : > { %856 = vst [vmem:[%s1249_s9 + $0x28] sm:$0xff] %v840_v53   ;;  %v850_v57 = vpack.c.bf16 %v586_v55, %v585_v54 }
 0x13b   : > { %857 = vst [vmem:[%s1249_s9 + $0x30] sm:$0xff] %v845_v56  }
 0x13c   : > { %858 = vst [vmem:[%s1249_s9 + $0x38] sm:$0xff] %v850_v57  }
 0x13d PF: > { %s31_s6 = sadd.s32 1, %s1087_s6   ;;  %s1323_s28 = smov %s1209_s26 }
 0x13e   : > { %p28_p13 = scmp.ge.s32.totalorder %s31_s6, 14   ;;  %s1324_s22 = sld [smem:[#allocation12_spill]] }
 0x13f   : > { %s1325_s26 = smov %s1063_s27  ;;  %s1326_s27 = smov %s1067_s0 }
 0x140   : > { %s1327_s0 = smov %s1323_s28  ;;  %s1328_s28 = smov %s1079_s29 }
 0x141   : > { %s1329_s1 = smov %s1083_s30  ;;  %s1330_s29 = smov %s1335_s7 }
 0x142   :  { %30 = sbr.rel (!%p28_p13) target bundleno = 12 (0xc), region = 87 }
 0x144   : > { %s1331_s30 = smov %s1324_s22 }
 0x147   :  { %641 = vsyncpa [#allocation7], 1 }
 0x148   :  { %643 = vsyncpa [#allocation7 + $0x1], 1 }

// kernel: gcn_forward.7
= control target key start
LH: loop header
LB: loop body
LE: loop exit
PB: predicated region body
PF: predicated region fallthrough
CT: control target
= control target key end

     0   :  { %s1253_s24 = smov [#allocation4]   ;;  %s1254_s25 = smov [#allocation5]   ;;  %s1617_s0 = inlined_call_operand.vmem [shape: s32[12], index: 0, kind: input, shape index: {}]   ;;  %s1618_s2 = inlined_call_operand.hbm [shape: bf16[512,512], index: 2, kind: input, shape index: {}]   ;;  %s1619_s3 = inlined_call_operand.vmem [shape: bf16[512,128], index: 3, kind: input, shape index: {}]   ;;  %s1620_s4 = inlined_call_operand.vmem [shape: f32[1,128], index: 4, kind: input, shape index: {}]   ;;  %s1621_s5 = inlined_call_operand.vmem [shape: f32[512,128], index: 5, kind: output, shape index: {}]   ;;  %s1622_s1 = inlined_call_operand.vmem [shape: s32[4], index: 1, kind: input, shape index: {}]  }
   0x1   :  { %s11_s20 = sshll.u32 %s1617_s0, 4  ;;  %s16_s23 = sshll.u32 %s1622_s1, 4  ;;  %s12_s20 = int_to_ptr.vmem [resolvable:$true] %s11_s20  ;;  %s17_s23 = int_to_ptr.vmem [resolvable:$true] %s16_s23 }
   0x2   :  { %14 = dma.vmem_to_smem %s12_s20, 16, %s1253_s24, [#allocation3] }
   0x3   :  { %19 = dma.vmem_to_smem %s17_s23, 16, %s1254_s25, [#allocation3] }
   0x4   :  { %1215 = dma.done.wait [#allocation3], 32 }
   0x5   :  { %1216 = vsyncadd [#allocation3], 4294967264 }
   0x6   :  { %22 = sfence }
   0x7   :  { %23 = vsyncpa [#allocation7], 0 }
   0x8   :  { %25 = vsyncpa [#allocation7 + $0x1], 0  ;;  %s1295_s26 = smov 0   ;;  %s1297_s27 = smov 0  }
   0x9   :  { %s1299_s0 = smov 0   ;;  %s1301_s28 = smov 0  }
   0xa   :  { %s1303_s1 = smov 0   ;;  %s1305_s29 = smov 0  }
   0xb   :  { %s1307_s30 = smov 0   ;;  %s1309_s6 = smov 0  }
   0xc LB: > { %s40_s7 = sadd.s32 1, %s1243_s29  ;;  %s43_s8 = sadd.s32 1, %s1247_s30  ;;  %s1251_s6 = sphi %s1309_s6, %s31_s6   ;;  %s1247_s30 = sphi %s1307_s30, %s1637_s30   ;;  %s1243_s29 = sphi %s1305_s29, %s1636_s29   ;;  %s1239_s1 = sphi %s1303_s1, %s1635_s1   ;;  %s1235_s28 = sphi %s1301_s28, %s1634_s28   ;;  %s1231_s0 = sphi %s1299_s0, %s1633_s0   ;;  %s1227_s27 = sphi %s1297_s27, %s1632_s27   ;;  %s1223_s26 = sphi %s1295_s26, %s1631_s26  }
   0xd   : > { %p41_p0 = scmp.ge.s32.totalorder %s40_s7, 3  ;;  %s859_s9 = sadd.s32 4294967295, %s1251_s6  }
   0xe   : > { %s47_s10 = smul.u32 3, %s1247_s30  ;;  %p65_p2 = scmp.ne.s32.totalorder %s1231_s0, %s1227_s27 }
   0xf   : > { %s1639_s8 = smov (!%p41_p0, %s43_s8), %s1247_s30  ;;  %s1641_s7 = smov (%p41_p0, %s40_s7), 0 }
  0x10   : > { %p45_p1 = scmp.ge.s32.totalorder %s1639_s8, 4  ;;  %p66_p3 = scmp.eq.s32.totalorder %s1251_s6, 0 }
  0x11   : > { %p71_p4 = scmp.ne.s32.totalorder %s1227_s27, %s1223_s26  ;;  %s48_s11 = sadd.s32 %s1243_s29, %s47_s10 }
  0x12   : > { %s1643_s8 = smov (%p45_p1, %s1639_s8), 0  ;;  %p72_p5 = scmp.eq.s32.totalorder %s859_s9, 0 }
  0x13   : > { %1624 = sst [smem:[#allocation12_spill]] %s1643_s8  ;;  %s50_s13 = smul.u32 3, %s1643_s8 }
  0x14   : > { %s49_s12 = sld [smem:[#allocation4 + %s48_s11]]  ;;  %p1348_p6 = por %p72_p5, %p71_p4 }
  0x15   : > { %s51_s15 = sadd.s32 %s50_s13, %s1641_s7  ;;  %p1353_p7 = por %p66_p3, %p65_p2 }
  0x16   : > { %s52_s17 = sld [smem:[#allocation4 + %s51_s15]]  ;;  %s177_s18 = sand.u32 1, %s1231_s0  }
  0x17   : > { %p993_p8 = scmp.lt.s32.totalorder %s1251_s6, 12  ;;  %s53_s19 = ssub.s32 %s1247_s30, %s1643_s8 }
  0x18   : > { %s863_s20 = sshll.u32 %s177_s18, 6  ;;  %s1645_s11 = smov (!%p1353_p7, %s48_s11), 0 }
  0x19   : > { %s983_s21 = scalar_select %p1353_p7, [#allocation4], [#allocation8] }
  0x1a   : > { %s58_s23 = sadd.s32 1, %s1231_s0  ;;  %p1368_p10 = pnand %p993_p8, %p1353_p7 }
  0x1b   : > { %s1647_s21 = smov (!%p993_p8, %s983_s21), [#allocation9]  ;;  %s1649_s11 = smov (!%p993_p8, %s1645_s11), 0 }
  0x1c   : > { %s54_s22 = ssub.s32 %s49_s12, %s52_s17  ;;  %s184_s9 = sld [smem:[%s1647_s21 + %s1649_s11]] }
  0x1d   : > { %s55_s24 = sor.u32 %s54_s22, %s53_s19  ;;  %s181_s10 = scalar_lea.vmem [#allocation6], %s863_s20 }
  0x1e   : > { %p56_p9 = scmp.eq.s32.totalorder %s55_s24, 0  ;;  %s1375_s13 = sshll.u32 %s181_s10, 4  ;;  %s195_s13 = int_to_ptr.vmem [resolvable:$true] %s1375_s13 }
  0x1f   : > { %p867_p11 = scmp.ge.s32.totalorder %s1251_s6, 1  ;;  %s942_s15 = sshll.u32 %s1247_s30, 6 }
  0x20   : > { %s1373_s26 = scalar_select %p56_p9, %s1231_s0, %s58_s23  }
  0x21   : > { %p217_p12 = scmp.lt.s32.totalorder %s1251_s6, 13  ;;  %s178_s20 = scalar_lea.sflag [#allocation7], %s177_s18 }
  0x22   : > { %s189_s16 = sadd.s32 %s942_s15, %s184_s9  ;;  %p1157_p1 = pneg %p1368_p10 }
  0x23   : > { %p1381_p13 = pnand %p867_p11, %p217_p12  ;;  %s866_s17 = sshll.u32 %s189_s16, 2 }
  0x24   : > { %s191_s23 = scalar_lea.hbm %s1618_s2, %s866_s17  ;;  %s1160_s9 = scalar_lea.hbm %s1618_s2, 1024 }
  0x25   : > { %s192_s11 = sshll.u32 %s191_s23, 4  ;;  %s193_s11 = int_to_ptr.hbm [resolvable:$true] %s192_s11 }
  0x26   : > { %s1153_s21 = sshra.s32 %s193_s11, 4  ;;  %s1154_s21 = int_to_ptr.hbm [resolvable:$true] %s1153_s21 }
  0x27   : > { %s1155_s24 = scalar_lea.hbm %s1154_s21, 64  ;;  %p1161_p4 = scmp.lt.s32.totalorder %s1154_s21, %s1618_s2 }
  0x28   : > { %p1156_p0 = scmp.ne.s32.totalorder %s1154_s21, %s1155_s24  ;;  %p1162_p5 = scmp.lt.s32.totalorder %s1160_s9, %s1155_s24 }
  0x2a   : > { %p1158_p2 = pnand %p1157_p1, %p1156_p0  ;;  %p1163_p7 = por %p1162_p5, %p1161_p4 }
  0x2c   : > { %p1159_p3 = pneg %p1158_p2 }
  0x2e   : > { %p1164_p8 = pnand %p1163_p7, %p1159_p3 }
  0x30   : > { %1167 = shalt.err (!%p1164_p8)
}
  0x31   : > { %s1255_s18 = smov 256   ;;  %s1256_s17 = smov 64  }
  0x32   : > { %s1257_s19 = smov 4   ;;  %221 = sbr.rel (%p1381_p13) target bundleno = 605 (0x25d), region = 32 }
  0x33   : > { %992 = dma.hbm_to_vmem [thread:$0]  (!%p1368_p10), %s193_s11, 1024, %s195_s13, %s178_s20, %s1255_s18, %s1256_s17, %s1257_s19  }
  0x34   : > { %s223_s8 = sand.u32 (!%p1381_p13), 1, %s1227_s27  }
  0x35   : > { %s868_s22 = sshll.u32 (!%p1381_p13), %s223_s8, 6  ;;  %s224_s23 = scalar_lea.sflag (!%p1381_p13), [#allocation7], %s223_s8 }
  0x36   : > { %s1401_s10 = scalar_lea.vmem (!%p1381_p13), [#allocation6], %s868_s22 }
  0x37   : > { %1218 = dma.done.wait (%p1348_p6), %s224_s23, 1024  }
  0x38   : > { %1220 = vsyncadd (%p1348_p6), %s224_s23, 4294966272  ;;  %s263_s25 = smul.u32 3, %s1239_s1  ;;  %s871_s13 = sshll.u32 %s1239_s1, 4 }
  0x39   : > { %p276_p9 = scmp.lt.s32.totalorder %s871_s13, 63  ;;  %p873_p6 = scmp.ne.s32.totalorder %s1235_s28, 0 }
  0x3a   : > { %s264_s12 = sadd.s32 %s1235_s28, %s263_s25 }
  0x3b   : > { %s265_s11 = sld [smem:[#allocation4 + %s264_s12]]  ;;  %s1651_s13 = smov (!%p276_p9, %s871_s13), 63 }
  0x3c   : > { %s872_s20 = sshll.u32 %s1651_s13, 3 }
  0x3d   : > { %s1413_s9 = scalar_lea.vmem %s1621_s5, %s872_s20 }
  0x41   : > { %s869_s15 = sshll.u32 %s265_s11, 4 }
  0x42   : > { %p267_p10 = scmp.lt.s32.totalorder %s869_s15, 63  ;;  %284 = sbr.rel (%p873_p6) target bundleno = 88 (0x58), region = 40 }
  0x44   : > { %s1653_s15 = smov (!%p267_p10, %s869_s15), 63 }
  0x45   : > { %s870_s14 = sshll.u32 %s1653_s15, 2 }
  0x46   : > { %s1418_s17 = scalar_lea.vmem %s1619_s3, %s870_s14 }
  0x47   : > { %v1258_v0 = vmov 0.0  }
  0x48   : > { %285 = vst [vmem:[#allocation2 + $0x30] sm:$0xff] %v1258_v0 }
  0x49   : > { %286 = vst [vmem:[#allocation2] sm:$0xff] %v1258_v0 }
  0x4a   : > { %287 = vst [vmem:[#allocation2 + $0x58] sm:$0xff] %v1258_v0 }
  0x4b   : > { %288 = vst [vmem:[#allocation2 + $0x18] sm:$0xff] %v1258_v0 }
  0x4c   : > { %289 = vst [vmem:[#allocation2 + $0x50] sm:$0xff] %v1258_v0 }
  0x4d   : > { %290 = vst [vmem:[#allocation2 + $0x68] sm:$0xff] %v1258_v0 }
  0x4e   : > { %291 = vst [vmem:[#allocation2 + $0x8] sm:$0xff] %v1258_v0 }
  0x4f   : > { %292 = vst [vmem:[#allocation2 + $0x48] sm:$0xff] %v1258_v0 }
  0x50   : > { %293 = vst [vmem:[#allocation2 + $0x40] sm:$0xff] %v1258_v0 }
  0x51   : > { %294 = vst [vmem:[#allocation2 + $0x20] sm:$0xff] %v1258_v0 }
  0x52   : > { %295 = vst [vmem:[#allocation2 + $0x10] sm:$0xff] %v1258_v0 }
  0x53   : > { %296 = vst [vmem:[#allocation2 + $0x38] sm:$0xff] %v1258_v0 }
  0x54   : > { %297 = vst [vmem:[#allocation2 + $0x60] sm:$0xff] %v1258_v0 }
  0x55   : > { %298 = vst [vmem:[#allocation2 + $0x70] sm:$0xff] %v1258_v0 }
  0x56   : > { %299 = vst [vmem:[#allocation2 + $0x78] sm:$0xff] %v1258_v0 }
  0x57   : > { %300 = vst [vmem:[#allocation2 + $0x28] sm:$0xff] %v1258_v0 }
  0x58 PF: > { %s301_s19 = sld [smem:[#allocation5 + %s1239_s1]] }
  0x5e   : > { %p874_p11 = scmp.ge.s32.totalorder %s1235_s28, %s301_s19 }
  0x60   : > { %305 = sbr.rel (%p874_p11) target bundleno = 294 (0x126), region = 44 }
  0x65   : > { %v958_v1 = vld [vmem:[%s1418_s17 + $0x38] sm:$0xff]  ;;  %v957_v2 = vld [vmem:[%s1418_s17 + $0x30] sm:$0xff]  ;;  %v956_v3 = vld [vmem:[%s1418_s17 + $0x28] sm:$0xff] }
  0x66   : > { %450 = vmatpush.bf16.msra.mxu0 %v958_v1  ;;  %959 = vmatpush.bf16.msra.mxu1 %v958_v1  ;;  %v955_v4 = vld [vmem:[%s1418_s17 + $0x20] sm:$0xff]  ;;  %v954_v5 = vld [vmem:[%s1418_s17 + $0x18] sm:$0xff]  ;;  %v953_v6 = vld [vmem:[%s1418_s17 + $0x10] sm:$0xff] }
  0x67   : > { %960 = vmatpush.bf16.msra.mxu2 %v958_v1  ;;  %961 = vmatpush.bf16.msra.mxu3 %v958_v1  ;;  %v952_v7 = vld [vmem:[%s1418_s17 + $0x8] sm:$0xff]  ;;  %v951_v8 = vld [vmem:[%s1418_s17] sm:$0xff]  ;;  %v945_v10 = vld [vmem:[%s1401_s10 + $0x10] sm:$0xff] }
  0x68   : > { %v943_v9 = vld [vmem:[%s1401_s10] sm:$0xff]  ;;  %v949_v12 = vld [vmem:[%s1401_s10 + $0x30] sm:$0xff]  ;;  %v944_v13 = vld [vmem:[%s1401_s10 + $0x8] sm:$0xff] }
  0x69   : > { %v947_v11 = vld [vmem:[%s1401_s10 + $0x20] sm:$0xff]  ;;  %v946_v14 = vld [vmem:[%s1401_s10 + $0x18] sm:$0xff]  ;;  %v948_v15 = vld [vmem:[%s1401_s10 + $0x28] sm:$0xff] }
  0x6a   : > { %451 = vmatpush.bf16.msra.mxu0 %v957_v2  ;;  %962 = vmatpush.bf16.msra.mxu1 %v957_v2  ;;  %v950_v16 = vld [vmem:[%s1401_s10 + $0x38] sm:$0xff]  ;;  %v306_v17 = vld [vmem:[#allocation2 + $0x30] sm:$0xff]  ;;  %v314_v23 = vld [vmem:[#allocation2 + $0x40] sm:$0xff] }
  0x6b   : > { %963 = vmatpush.bf16.msra.mxu2 %v957_v2  ;;  %964 = vmatpush.bf16.msra.mxu3 %v957_v2  ;;  %v310_v18 = vld [vmem:[#allocation2 + $0x50] sm:$0xff]  ;;  %v318_v24 = vld [vmem:[#allocation2 + $0x60] sm:$0xff]  ;;  %v311_v26 = vld [vmem:[#allocation2 + $0x68] sm:$0xff] }
  0x6c   : > { %v307_v25 = vld [vmem:[#allocation2] sm:$0xff]  ;;  %v319_v36 = vld [vmem:[#allocation2 + $0x70] sm:$0xff]  ;;  %v308_v37 = vld [vmem:[#allocation2 + $0x58] sm:$0xff] }
  0x6d   : > { %v315_v35 = vld [vmem:[#allocation2 + $0x20] sm:$0xff]  ;;  %v312_v38 = vld [vmem:[#allocation2 + $0x8] sm:$0xff]  ;;  %v316_v47 = vld [vmem:[#allocation2 + $0x10] sm:$0xff] }
  0x6e   : > { %452 = vmatpush.bf16.msra.mxu0 %v956_v3  ;;  %965 = vmatpush.bf16.msra.mxu1 %v956_v3  ;;  %v320_v48 = vld [vmem:[#allocation2 + $0x78] sm:$0xff]  ;;  %v313_v50 = vld [vmem:[#allocation2 + $0x48] sm:$0xff] }
  0x6f   : > { %966 = vmatpush.bf16.msra.mxu2 %v956_v3  ;;  %967 = vmatpush.bf16.msra.mxu3 %v956_v3  ;;  %v309_v49 = vld [vmem:[#allocation2 + $0x18] sm:$0xff]  ;;  %v321_v60 = vld [vmem:[#allocation2 + $0x28] sm:$0xff] }
  0x70   : > { %v317_v59 = vld [vmem:[#allocation2 + $0x38] sm:$0xff] }
  0x72   : > { %453 = vmatpush.bf16.msra.mxu0 %v955_v4  ;;  %968 = vmatpush.bf16.msra.mxu1 %v955_v4 }
  0x73   : > { %969 = vmatpush.bf16.msra.mxu2 %v955_v4  ;;  %970 = vmatpush.bf16.msra.mxu3 %v955_v4 }
  0x76   : > { %454 = vmatpush.bf16.msra.mxu0 %v954_v5  ;;  %971 = vmatpush.bf16.msra.mxu1 %v954_v5 }
  0x77   : > { %972 = vmatpush.bf16.msra.mxu2 %v954_v5  ;;  %973 = vmatpush.bf16.msra.mxu3 %v954_v5 }
  0x7a   : > { %455 = vmatpush.bf16.msra.mxu0 %v953_v6  ;;  %974 = vmatpush.bf16.msra.mxu1 %v953_v6 }
  0x7b   : > { %975 = vmatpush.bf16.msra.mxu2 %v953_v6  ;;  %976 = vmatpush.bf16.msra.mxu3 %v953_v6 }
  0x7e   : > { %456 = vmatpush.bf16.msra.mxu0 %v952_v7  ;;  %977 = vmatpush.bf16.msra.mxu1 %v952_v7 }
  0x7f   : > { %978 = vmatpush.bf16.msra.mxu2 %v952_v7  ;;  %979 = vmatpush.bf16.msra.mxu3 %v952_v7 }
  0x82   : > { %457 = vmatpush.bf16.msra.mxu0 %v951_v8  ;;  %980 = vmatpush.bf16.msra.mxu1 %v951_v8 }
  0x83   : > { %981 = vmatpush.bf16.msra.mxu2 %v951_v8  ;;  %982 = vmatpush.bf16.msra.mxu3 %v951_v8 }
  0x85   : > { %458 = vmatmul.bf16.vlgmr.msra.gmra.mxu0 %v943_v9  ;;  %468 = vmatmul.bf16.vlgmr.msra.gmra.mxu1 %v945_v10 }
  0x86   : > { %478 = vmatmul.bf16.vlgmr.msra.gmra.mxu2 %v947_v11  ;;  %488 = vmatmul.bf16.vlgmr.msra.gmra.mxu3 %v949_v12 }
  0x95   : > { %463 = vmatmul.bf16.gmra.mxu0 %v944_v13  ;;  %473 = vmatmul.bf16.gmra.mxu1 %v946_v14 }
  0x96   : > { %483 = vmatmul.bf16.gmra.mxu2 %v948_v15  ;;  %493 = vmatmul.bf16.gmra.mxu3 %v950_v16 }
 0x102   : > { %v459_v19 = vpop.f32.mrf.mxu0  ;;  %v469_v20 = vpop.f32.mrf.mxu1 }
 0x103   : > { %v499_v21 = vadd.f32 %v459_v19, %v306_v17  ;;  %v503_v22 = vadd.f32 %v469_v20, %v310_v18 }
 0x105   : > { %515 = vst [vmem:[#allocation2 + $0x30] sm:$0xff] %v499_v21 }
 0x106   : > { %519 = vst [vmem:[#allocation2 + $0x50] sm:$0xff] %v503_v22 }
 0x109   : > { %v479_v27 = vpop.f32.mrf.mxu2  ;;  %v489_v28 = vpop.f32.mrf.mxu3 }
 0x10a   : > { %v507_v29 = vadd.f32 %v479_v27, %v314_v23  ;;  %v511_v30 = vadd.f32 %v489_v28, %v318_v24  ;;  %v461_v31 = vpop.f32.mrf.mxu0  ;;  %v471_v32 = vpop.f32.mrf.mxu1 }
 0x10b   : > { %v500_v33 = vadd.f32 %v461_v31, %v307_v25  ;;  %v504_v34 = vadd.f32 %v471_v32, %v311_v26 }
 0x10c   : > { %523 = vst [vmem:[#allocation2 + $0x40] sm:$0xff] %v507_v29 }
 0x10d   : > { %527 = vst [vmem:[#allocation2 + $0x60] sm:$0xff] %v511_v30 }
 0x10e   : > { %516 = vst [vmem:[#allocation2] sm:$0xff] %v500_v33 }
 0x10f   : > { %520 = vst [vmem:[#allocation2 + $0x68] sm:$0xff] %v504_v34 }
 0x111   : > { %v481_v39 = vpop.f32.mrf.mxu2  ;;  %v491_v40 = vpop.f32.mrf.mxu3 }
 0x112   : > { %v508_v41 = vadd.f32 %v481_v39, %v315_v35  ;;  %v512_v42 = vadd.f32 %v491_v40, %v319_v36  ;;  %v464_v43 = vpop.f32.mrf.mxu0  ;;  %v474_v44 = vpop.f32.mrf.mxu1 }
 0x113   : > { %v501_v45 = vadd.f32 %v464_v43, %v308_v37  ;;  %v505_v46 = vadd.f32 %v474_v44, %v312_v38 }
 0x114   : > { %524 = vst [vmem:[#allocation2 + $0x20] sm:$0xff] %v508_v41 }
 0x115   : > { %528 = vst [vmem:[#allocation2 + $0x70] sm:$0xff] %v512_v42 }
 0x116   : > { %517 = vst [vmem:[#allocation2 + $0x58] sm:$0xff] %v501_v45 }
 0x117   : > { %521 = vst [vmem:[#allocation2 + $0x8] sm:$0xff] %v505_v46 }
 0x119   : > { %v484_v51 = vpop.f32.mrf.mxu2  ;;  %v494_v52 = vpop.f32.mrf.mxu3 }
 0x11a   : > { %v509_v53 = vadd.f32 %v484_v51, %v316_v47  ;;  %v513_v54 = vadd.f32 %v494_v52, %v320_v48  ;;  %v466_v55 = vpop.f32.mrf.mxu0  ;;  %v476_v56 = vpop.f32.mrf.mxu1 }
 0x11b   : > { %v502_v57 = vadd.f32 %v466_v55, %v309_v49  ;;  %v506_v58 = vadd.f32 %v476_v56, %v313_v50 }
 0x11c   : > { %525 = vst [vmem:[#allocation2 + $0x10] sm:$0xff] %v509_v53 }
 0x11d   : > { %529 = vst [vmem:[#allocation2 + $0x78] sm:$0xff] %v513_v54 }
 0x11e   : > { %518 = vst [vmem:[#allocation2 + $0x18] sm:$0xff] %v502_v57 }
 0x11f   : > { %522 = vst [vmem:[#allocation2 + $0x48] sm:$0xff] %v506_v58 }
 0x121   : > { %v486_v61 = vpop.f32.mrf.mxu2  ;;  %v496_v62 = vpop.f32.mrf.mxu3 }
 0x122   : > { %v510_v63 = vadd.f32 %v486_v61, %v317_v59  ;;  %v514_v0 = vadd.f32 %v496_v62, %v321_v60 }
 0x124   : > { %526 = vst [vmem:[#allocation2 + $0x38] sm:$0xff] %v510_v63 }
 0x125   : > { %530 = vst [vmem:[#allocation2 + $0x28] sm:$0xff] %v514_v0 }
 0x126 PF: > { %p939_p12 = scmp.ne.s32.totalorder %s1235_s28, 2 }
 0x128   : > { %534 = sbr.rel (%p939_p12) target bundleno = 605 (0x25d), region = 48 }
 0x12d   : > { %v539_v1 = vld [vmem:[#allocation2 + $0x50] sm:$0xff]  ;;  %v1443_v2 = vld [vmem:[%s1620_s4] ss:$0 sm:$0xff]  ;;  %v571_v3 = vlaneseq  ;;  %v537_v4 = vld [vmem:[#allocation2 + $0x58] sm:$0xff] }
 0x12e   : > { %v535_v5 = vld [vmem:[#allocation2 + $0x30] sm:$0xff]  ;;  %v559_v6 = vadd.f32 %v1443_v2, %v539_v1  ;;  %v557_v8 = vadd.f32 %v1443_v2, %v537_v4  ;;  %v540_v10 = vld [vmem:[#allocation2 + $0x68] sm:$0xff]  ;;  %v538_v11 = vld [vmem:[#allocation2 + $0x18] sm:$0xff] }
 0x12f   : > { %v572_v7 = vand.u32 127, %v571_v3  ;;  %v555_v9 = vadd.f32 %v1443_v2, %v535_v5  ;;  %v536_v12 = vld [vmem:[#allocation2] sm:$0xff]  ;;  %v560_v16 = vadd.f32 %v1443_v2, %v540_v10  ;;  %v558_v17 = vadd.f32 %v1443_v2, %v538_v11  ;;  %v542_v23 = vld [vmem:[#allocation2 + $0x48] sm:$0xff]  ;;  %v546_v31 = vld [vmem:[#allocation2 + $0x38] sm:$0xff] }
 0x130   : > { %v556_v18 = vadd.f32 %v1443_v2, %v536_v12  ;;  %v543_v22 = vld [vmem:[#allocation2 + $0x40] sm:$0xff]  ;;  %v541_v24 = vld [vmem:[#allocation2 + $0x8] sm:$0xff]  ;;  %v562_v26 = vadd.f32 %v1443_v2, %v542_v23  ;;  %v545_v32 = vld [vmem:[#allocation2 + $0x10] sm:$0xff]  ;;  %v566_v34 = vadd.f32 %v1443_v2, %v546_v31 }
 0x131   : > { %vm573_vm0 = vcmp.lt.s32.totalorder %v572_v7, 7  ;;  %v563_v25 = vadd.f32 %v1443_v2, %v543_v22  ;;  %v561_v27 = vadd.f32 %v1443_v2, %v541_v24  ;;  %v544_v33 = vld [vmem:[#allocation2 + $0x20] sm:$0xff]  ;;  %v565_v35 = vadd.f32 %v1443_v2, %v545_v32  ;;  %v549_v40 = vld [vmem:[#allocation2 + $0x78] sm:$0xff]  ;;  %v548_v41 = vld [vmem:[#allocation2 + $0x70] sm:$0xff] }
 0x132   : > { %v1449_v13 = vsel %vm573_vm0, %v559_v6, -1e+30  ;;  %v576_v14 = vsel %vm573_vm0, %v557_v8, -1e+30  ;;  %v574_v15 = vsel %vm573_vm0, %v555_v9, -1e+30  ;;  %v564_v36 = vadd.f32 %v1443_v2, %v544_v33 }
 0x133   : > { %598 = vmax.xlane.f32.xlu2 %v1449_v13  ;;  %594 = vmax.xlane.f32.xlu1 %v576_v14  ;;  %v579_v19 = vsel %vm573_vm0, %v560_v16, -1e+30  ;;  %v577_v20 = vsel %vm573_vm0, %v558_v17, -1e+30  ;;  %v575_v21 = vsel %vm573_vm0, %v556_v18, -1e+30  ;;  %v569_v43 = vadd.f32 %v1443_v2, %v549_v40 }
 0x134   : > { %590 = vmax.xlane.f32.xlu0 %v574_v15  ;;  %v582_v28 = vsel %vm573_vm0, %v563_v25, -1e+30  ;;  %v1465_v29 = vsel %vm573_vm0, %v562_v26, -1e+30  ;;  %v580_v30 = vsel %vm573_vm0, %v561_v27, -1e+30  ;;  %v568_v44 = vadd.f32 %v1443_v2, %v548_v41 }
 0x135   : > { %v1473_v37 = vsel %vm573_vm0, %v566_v34, -1e+30  ;;  %v1476_v38 = vsel %vm573_vm0, %v565_v35, -1e+30  ;;  %v1479_v39 = vsel %vm573_vm0, %v564_v36, -1e+30 }
 0x136   : > { %v547_v42 = vld [vmem:[#allocation2 + $0x60] sm:$0xff]  ;;  %v1488_v46 = vsel %vm573_vm0, %v569_v43, -1e+30  ;;  %v1491_v47 = vsel %vm573_vm0, %v568_v44, -1e+30  ;;  %v550_v49 = vld [vmem:[#allocation2 + $0x28] sm:$0xff] }
 0x137   : > { %v567_v45 = vadd.f32 %v1443_v2, %v547_v42  ;;  %v570_v50 = vadd.f32 %v1443_v2, %v550_v49 }
 0x139   : > { %v1494_v48 = vsel %vm573_vm0, %v567_v45, -1e+30  ;;  %v1501_v51 = vsel %vm573_vm0, %v570_v50, -1e+30 }
 0x13b   : > { %600 = vmax.xlane.f32.xlu2 %v579_v19  ;;  %596 = vmax.xlane.f32.xlu1 %v577_v20 }
 0x13c   : > { %592 = vmax.xlane.f32.xlu0 %v575_v21 }
 0x143   : > { %606 = vmax.xlane.f32.xlu2 %v582_v28  ;;  %604 = vmax.xlane.f32.xlu1 %v1465_v29 }
 0x144   : > { %602 = vmax.xlane.f32.xlu0 %v580_v30 }
 0x14b   : > { %612 = vmax.xlane.f32.xlu2 %v1473_v37  ;;  %610 = vmax.xlane.f32.xlu1 %v1476_v38 }
 0x14c   : > { %608 = vmax.xlane.f32.xlu0 %v1479_v39 }
 0x153   : > { %618 = vmax.xlane.f32.xlu2 %v1488_v46  ;;  %616 = vmax.xlane.f32.xlu1 %v1491_v47 }
 0x154   : > { %614 = vmax.xlane.f32.xlu0 %v1494_v48 }
 0x15c   : > { %620 = vmax.xlane.f32.xlu0 %v1501_v51 }
 0x1a6   : > { %v599_v52 = vpop.xlane.xlu2 %598  ;;  %v595_v53 = vpop.xlane.xlu1 %594 }
 0x1a7   : > { %v1504_v54 = vsub.f32 %v576_v14, %v595_v53  ;;  %v591_v55 = vpop.xlane.xlu0 %590  ;;  %v1520_v6 = vsub.f32 %v1449_v13, %v599_v52 }
 0x1a8   : > { %v1506_v56 = vsub.f32 %v574_v15, %v591_v55 }
 0x1a9   : > { %v642_v57 = vmul.f32 1.442695, %v1504_v54  ;;  %v646_v14 = vmul.f32 1.442695, %v1520_v6 }
 0x1aa   : > { %v638_v58 = vmul.f32 1.442695, %v1506_v56 }
 0x1ab   : > { %1065 = vpow2.f32 %v642_v57 }
 0x1ac   : > { %1067 = vpow2.f32 %v638_v58 }
 0x1ae   : > { %v601_v59 = vpop.xlane.xlu2 %600  ;;  %v597_v60 = vpop.xlane.xlu1 %596 }
 0x1af   : > { %v1510_v61 = vsub.f32 %v579_v19, %v601_v59  ;;  %v1512_v62 = vsub.f32 %v577_v20, %v597_v60  ;;  %v593_v63 = vpop.xlane.xlu0 %592 }
 0x1b0   : > { %v1514_v0 = vsub.f32 %v575_v21, %v593_v63 }
 0x1b1   : > { %v648_v1 = vmul.f32 1.442695, %v1510_v61  ;;  %v644_v2 = vmul.f32 1.442695, %v1512_v62  ;;  %v1066_v3 = vpop.eup %1065 }
 0x1b2   : > { %v640_v4 = vmul.f32 1.442695, %v1514_v0  ;;  %v1068_v5 = vpop.eup %1067  ;;  %674 = vadd.xlane.f32.xlu0 %v1066_v3 }
 0x1b3   : > { %1069 = vpow2.f32 %v648_v1  ;;  %670 = vadd.xlane.f32.xlu1 %v1068_v5 }
 0x1b4   : > { %1071 = vpow2.f32 %v644_v2 }
 0x1b5   : > { %1073 = vpow2.f32 %v640_v4 }
 0x1b6   : > { %v607_v7 = vpop.xlane.xlu2 %606  ;;  %v605_v8 = vpop.xlane.xlu1 %604 }
 0x1b7   : > { %v1522_v9 = vsub.f32 %v582_v28, %v607_v7  ;;  %v603_v10 = vpop.xlane.xlu0 %602  ;;  %v1530_v18 = vsub.f32 %v1465_v29, %v605_v8 }
 0x1b8   : > { %v1524_v11 = vsub.f32 %v580_v30, %v603_v10 }
 0x1b9   : > { %v1070_v12 = vpop.eup %1069  ;;  %v654_v15 = vmul.f32 1.442695, %v1522_v9  ;;  %v652_v20 = vmul.f32 1.442695, %v1530_v18 }
 0x1ba   : > { %v1072_v16 = vpop.eup %1071  ;;  %v650_v17 = vmul.f32 1.442695, %v1524_v11  ;;  %680 = vadd.xlane.f32.xlu0 %v1070_v12 }
 0x1bb   : > { %v1074_v13 = vpop.eup %1073  ;;  %1075 = vpow2.f32 %v654_v15  ;;  %676 = vadd.xlane.f32.xlu1 %v1072_v16 }
 0x1bc   : > { %1077 = vpow2.f32 %v650_v17  ;;  %672 = vadd.xlane.f32.xlu2 %v1074_v13 }
 0x1bd   : > { %1079 = vpow2.f32 %v646_v14 }
 0x1be   : > { %v613_v19 = vpop.xlane.xlu2 %612  ;;  %v611_v21 = vpop.xlane.xlu1 %610  ;;  %1081 = vpow2.f32 %v652_v20 }
 0x1bf   : > { %v1534_v22 = vsub.f32 %v1473_v37, %v613_v19  ;;  %v609_v23 = vpop.xlane.xlu0 %608  ;;  %v1542_v29 = vsub.f32 %v1476_v38, %v611_v21 }
 0x1c0   : > { %v1537_v24 = vsub.f32 %v1479_v39, %v609_v23 }
 0x1c1   : > { %v1076_v25 = vpop.eup %1075  ;;  %v660_v26 = vmul.f32 1.442695, %v1534_v22  ;;  %v658_v32 = vmul.f32 1.442695, %v1542_v29 }
 0x1c2   : > { %v1078_v27 = vpop.eup %1077  ;;  %v656_v28 = vmul.f32 1.442695, %v1537_v24  ;;  %686 = vadd.xlane.f32.xlu0 %v1076_v25 }
 0x1c3   : > { %v1080_v30 = vpop.eup %1079  ;;  %1083 = vpow2.f32 %v660_v26  ;;  %682 = vadd.xlane.f32.xlu1 %v1078_v27 }
 0x1c4   : > { %1085 = vpow2.f32 %v656_v28  ;;  %678 = vadd.xlane.f32.xlu2 %v1080_v30  ;;  %v1082_v35 = vpop.eup %1081 }
 0x1c5   : > { %1087 = vpow2.f32 %v658_v32 }
 0x1c6   : > { %v619_v31 = vpop.xlane.xlu2 %618  ;;  %v617_v37 = vpop.xlane.xlu1 %616 }
 0x1c7   : > { %v1546_v33 = vsub.f32 %v1488_v46, %v619_v31  ;;  %v615_v34 = vpop.xlane.xlu0 %614  ;;  %v1554_v42 = vsub.f32 %v1491_v47, %v617_v37 }
 0x1c8   : > { %v1549_v36 = vsub.f32 %v1494_v48, %v615_v34 }
 0x1c9   : > { %v1084_v38 = vpop.eup %1083  ;;  %v666_v39 = vmul.f32 1.442695, %v1546_v33  ;;  %v664_v43 = vmul.f32 1.442695, %v1554_v42 }
 0x1ca   : > { %v1086_v40 = vpop.eup %1085  ;;  %v662_v41 = vmul.f32 1.442695, %v1549_v36  ;;  %692 = vadd.xlane.f32.xlu0 %v1084_v38 }
 0x1cb   : > { %1089 = vpow2.f32 %v666_v39  ;;  %688 = vadd.xlane.f32.xlu1 %v1086_v40  ;;  %v1088_v45 = vpop.eup %1087 }
 0x1cc   : > { %1091 = vpow2.f32 %v662_v41  ;;  %684 = vadd.xlane.f32.xlu2 %v1082_v35 }
 0x1cd   : > { %1093 = vpow2.f32 %v664_v43 }
 0x1cf   : > { %v621_v44 = vpop.xlane.xlu0 %620 }
 0x1d0   : > { %v1558_v46 = vsub.f32 %v1501_v51, %v621_v44 }
 0x1d1   : > { %v1090_v48 = vpop.eup %1089 }
 0x1d2   : > { %v1092_v49 = vpop.eup %1091  ;;  %v668_v50 = vmul.f32 1.442695, %v1558_v46  ;;  %698 = vadd.xlane.f32.xlu0 %v1090_v48 }
 0x1d3   : > { %694 = vadd.xlane.f32.xlu1 %v1092_v49  ;;  %v1094_v47 = vpop.eup %1093 }
 0x1d4   : > { %1095 = vpow2.f32 %v668_v50  ;;  %690 = vadd.xlane.f32.xlu2 %v1088_v45 }
 0x1da   : > { %v1096_v52 = vpop.eup %1095 }
 0x1db   : > { %700 = vadd.xlane.f32.xlu1 %v1096_v52 }
 0x1dc   : > { %696 = vadd.xlane.f32.xlu2 %v1094_v47 }
 0x225   : > { %v675_v53 = vpop.xlane.xlu0 %674 }
 0x226   : > { %v671_v55 = vpop.xlane.xlu1 %670  ;;  %1097 = vlog2.f32 %v675_v53 }
 0x227   : > { %1099 = vlog2.f32 %v671_v55 }
 0x22c   : > { %v1098_v51 = vpop.eup %1097 }
 0x22d   : > { %v1100_v57 = vpop.eup %1099  ;;  %v707_v58 = vmul.f32 0.6931472, %v1098_v51  ;;  %v681_v59 = vpop.xlane.xlu0 %680 }
 0x22e   : > { %v703_v60 = vmul.f32 0.6931472, %v1100_v57  ;;  %v677_v63 = vpop.xlane.xlu1 %676  ;;  %1101 = vlog2.f32 %v681_v59 }
 0x22f   : > { %v673_v1 = vpop.xlane.xlu2 %672  ;;  %v736_v2 = vsub.f32 %v1504_v54, %v707_v58  ;;  %1103 = vlog2.f32 %v677_v63 }
 0x230   : > { %v734_v3 = vsub.f32 %v1506_v56, %v703_v60  ;;  %1105 = vlog2.f32 %v673_v1 }
 0x231   : > { %752 = vst [vmem:[%s1413_s9 + $0x10] sm:$0xff] %v736_v2 }
 0x232   : > { %750 = vst [vmem:[%s1413_s9] sm:$0xff] %v734_v3 }
 0x234   : > { %v1102_v4 = vpop.eup %1101 }
 0x235   : > { %v1104_v5 = vpop.eup %1103  ;;  %v713_v7 = vmul.f32 0.6931472, %v1102_v4  ;;  %v687_v8 = vpop.xlane.xlu0 %686 }
 0x236   : > { %v1106_v10 = vpop.eup %1105  ;;  %v709_v12 = vmul.f32 0.6931472, %v1104_v5  ;;  %v683_v15 = vpop.xlane.xlu1 %682  ;;  %1107 = vlog2.f32 %v687_v8 }
 0x237   : > { %v679_v14 = vpop.xlane.xlu2 %678  ;;  %v705_v16 = vmul.f32 0.6931472, %v1106_v10  ;;  %v739_v54 = vsub.f32 %v1510_v61, %v713_v7 }
 0x238   : > { %1109 = vlog2.f32 %v679_v14  ;;  %v737_v56 = vsub.f32 %v1512_v62, %v709_v12 }
 0x239   : > { %1111 = vlog2.f32 %v683_v15  ;;  %v735_v17 = vsub.f32 %v1514_v0, %v705_v16  ;;  %755 = vst [vmem:[%s1413_s9 + $0x28] sm:$0xff] %v739_v54 }
 0x23a   : > { %753 = vst [vmem:[%s1413_s9 + $0x18] sm:$0xff] %v737_v56 }
 0x23b   : > { %751 = vst [vmem:[%s1413_s9 + $0x8] sm:$0xff] %v735_v17 }
 0x23c   : > { %v1108_v13 = vpop.eup %1107 }
 0x23d   : > { %v719_v20 = vmul.f32 0.6931472, %v1108_v13  ;;  %v693_v21 = vpop.xlane.xlu0 %692 }
 0x23e   : > { %v1110_v19 = vpop.eup %1109  ;;  %v689_v61 = vpop.xlane.xlu1 %688  ;;  %1113 = vlog2.f32 %v693_v21 }
 0x23f   : > { %v1112_v23 = vpop.eup %1111  ;;  %v711_v25 = vmul.f32 0.6931472, %v1110_v19  ;;  %v685_v26 = vpop.xlane.xlu2 %684  ;;  %v742_v62 = vsub.f32 %v1522_v9, %v719_v20 }
 0x240   : > { %v715_v27 = vmul.f32 0.6931472, %v1112_v23  ;;  %1115 = vlog2.f32 %v685_v26 }
 0x241   : > { %v738_v0 = vsub.f32 %v1520_v6, %v711_v25  ;;  %1117 = vlog2.f32 %v689_v61  ;;  %758 = vst [vmem:[%s1413_s9 + $0x40] sm:$0xff] %v742_v62 }
 0x242   : > { %v740_v28 = vsub.f32 %v1524_v11, %v715_v27 }
 0x243   : > { %754 = vst [vmem:[%s1413_s9 + $0x20] sm:$0xff] %v738_v0 }
 0x244   : > { %756 = vst [vmem:[%s1413_s9 + $0x30] sm:$0xff] %v740_v28  ;;  %v1114_v30 = vpop.eup %1113 }
 0x245   : > { %v725_v32 = vmul.f32 0.6931472, %v1114_v30  ;;  %v699_v34 = vpop.xlane.xlu0 %698 }
 0x246   : > { %v1116_v31 = vpop.eup %1115  ;;  %v695_v9 = vpop.xlane.xlu1 %694  ;;  %1119 = vlog2.f32 %v699_v34 }
 0x247   : > { %v1118_v35 = vpop.eup %1117  ;;  %v717_v37 = vmul.f32 0.6931472, %v1116_v31  ;;  %v691_v38 = vpop.xlane.xlu2 %690  ;;  %v745_v6 = vsub.f32 %v1534_v22, %v725_v32 }
 0x248   : > { %v721_v39 = vmul.f32 0.6931472, %v1118_v35  ;;  %1121 = vlog2.f32 %v691_v38 }
 0x249   : > { %v741_v11 = vsub.f32 %v1530_v18, %v717_v37  ;;  %1123 = vlog2.f32 %v695_v9  ;;  %761 = vst [vmem:[%s1413_s9 + $0x58] sm:$0xff] %v745_v6 }
 0x24a   : > { %v743_v40 = vsub.f32 %v1537_v24, %v721_v39 }
 0x24b   : > { %757 = vst [vmem:[%s1413_s9 + $0x38] sm:$0xff] %v741_v11 }
 0x24c   : > { %759 = vst [vmem:[%s1413_s9 + $0x48] sm:$0xff] %v743_v40  ;;  %v1120_v41 = vpop.eup %1119 }
 0x24d   : > { %v731_v44 = vmul.f32 0.6931472, %v1120_v41 }
 0x24e   : > { %v1122_v43 = vpop.eup %1121  ;;  %v701_v50 = vpop.xlane.xlu1 %700 }
 0x24f   : > { %v1124_v45 = vpop.eup %1123  ;;  %v723_v48 = vmul.f32 0.6931472, %v1122_v43  ;;  %v697_v49 = vpop.xlane.xlu2 %696  ;;  %v748_v18 = vsub.f32 %v1546_v33, %v731_v44 }
 0x250   : > { %v727_v22 = vmul.f32 0.6931472, %v1124_v45  ;;  %1125 = vlog2.f32 %v697_v49 }
 0x251   : > { %v744_v24 = vsub.f32 %v1542_v29, %v723_v48  ;;  %1127 = vlog2.f32 %v701_v50  ;;  %764 = vst [vmem:[%s1413_s9 + $0x70] sm:$0xff] %v748_v18 }
 0x252   : > { %v746_v47 = vsub.f32 %v1549_v36, %v727_v22 }
 0x253   : > { %760 = vst [vmem:[%s1413_s9 + $0x50] sm:$0xff] %v744_v24 }
 0x254   : > { %762 = vst [vmem:[%s1413_s9 + $0x60] sm:$0xff] %v746_v47 }
 0x256   : > { %v1126_v52 = vpop.eup %1125 }
 0x257   : > { %v1128_v53 = vpop.eup %1127  ;;  %v729_v55 = vmul.f32 0.6931472, %v1126_v52 }
 0x258   : > { %v733_v51 = vmul.f32 0.6931472, %v1128_v53 }
 0x259   : > { %v747_v57 = vsub.f32 %v1554_v42, %v729_v55 }
 0x25a   : > { %v749_v58 = vsub.f32 %v1558_v46, %v733_v51 }
 0x25b   : > { %763 = vst [vmem:[%s1413_s9 + $0x68] sm:$0xff] %v747_v57 }
 0x25c   : > { %765 = vst [vmem:[%s1413_s9 + $0x78] sm:$0xff] %v749_v58 }
 0x25d PF: > { %s31_s6 = sadd.s32 1, %s1251_s6   ;;  %s1629_s28 = smov %s1373_s26 }
 0x25e   : > { %p28_p13 = scmp.ge.s32.totalorder %s31_s6, 14   ;;  %s1630_s22 = sld [smem:[#allocation12_spill]] }
 0x25f   : > { %s1631_s26 = smov %s1227_s27  ;;  %s1632_s27 = smov %s1231_s0 }
 0x260   : > { %s1633_s0 = smov %s1629_s28  ;;  %s1634_s28 = smov %s1243_s29 }
 0x261   : > { %s1635_s1 = smov %s1247_s30  ;;  %s1636_s29 = smov %s1641_s7 }
 0x262   :  { %30 = sbr.rel (!%p28_p13) target bundleno = 12 (0xc), region = 87 }
 0x264   : > { %s1637_s30 = smov %s1630_s22 }
 0x267   :  { %788 = vsyncpa [#allocation7], 1 }
 0x268   :  { %790 = vsyncpa [#allocation7 + $0x1], 1 }

</bundles_post_ra>
